<compile_context>
chip_gen: v7x
topology: tpu7x:2x2x1
jax: 0.10.0
libtpu: 0.0.40
codegen_flags: <defaults>
</compile_context>

<pallas_src>
import functools

import numpy as np
import jax
import jax.numpy as jnp
from jax.experimental import pallas as pl
from jax.experimental.pallas import tpu as pltpu

# ----------------------------- configuration (small, synthetic) -------------
B = 2
IN_CHANS = 4
NUM_FRAMES = 1
IMG = 16
PATCH_SIZE = (1, 8, 8)
EMBED_DIM = 32            # must be divisible by 16 for the 3D sincos embed
DEPTH = 2
NUM_HEADS = 4
MLP_RATIO = 4.0
MASK_RATIO = 0.5
LN_EPS = 1e-6


def _round_up(x, m):
    return (x + m - 1) // m * m


# ----------------------------- sincos positional embeddings (glue) ----------
def get_1d_sincos_pos_embed_from_grid(embed_dim, pos):
    assert embed_dim % 2 == 0
    omega = np.arange(embed_dim // 2, dtype=np.float64) / (embed_dim / 2.0)
    omega = 1.0 / 10000 ** omega
    pos = np.asarray(pos, dtype=np.float64).reshape(-1)
    out = np.einsum("m,d->md", pos, omega)
    return np.concatenate([np.sin(out), np.cos(out)], axis=1)


def get_3d_sincos_pos_embed(embed_dim, grid_size, add_cls_token=False):
    assert embed_dim % 16 == 0
    t_size, h_size, w_size = grid_size
    w_dim = embed_dim // 16 * 6
    h_dim = embed_dim // 16 * 6
    t_dim = embed_dim // 16 * 4
    w_pos = get_1d_sincos_pos_embed_from_grid(w_dim, np.arange(w_size))
    h_pos = get_1d_sincos_pos_embed_from_grid(h_dim, np.arange(h_size))
    t_pos = get_1d_sincos_pos_embed_from_grid(t_dim, np.arange(t_size))
    w_pos = np.tile(w_pos, (t_size * h_size, 1))
    h_pos = np.tile(np.repeat(h_pos, w_size, axis=0), (t_size, 1))
    t_pos = np.repeat(t_pos, h_size * w_size, axis=0)
    pos = np.concatenate((w_pos, h_pos, t_pos), axis=1)
    if add_cls_token:
        pos = np.concatenate([np.zeros([1, embed_dim]), pos], axis=0)
    return pos


# ----------------------------- fused encoder kernel --------------------------
def _layer_norm(x, gamma, beta, eps=LN_EPS):
    mu = jnp.mean(x, axis=-1, keepdims=True)
    var = jnp.mean(jnp.square(x - mu), axis=-1, keepdims=True)
    return (x - mu) * jax.lax.rsqrt(var + eps) * gamma + beta


def encoder_kernel(
    xk_ref, add_ref, pw_ref,
    ln1g_ref, ln1b_ref, wq_ref, wk_ref, wv_ref, bq_ref, bk_ref, bv_ref,
    wproj_ref, bproj_ref,
    ln2g_ref, ln2b_ref, wfc1_ref, bfc1_ref, wfc2_ref, bfc2_ref,
    ng_ref, nb_ref,
    o_ref,
    seq_ref,
    *, num_heads, seq_valid,
):
    """One (sample b, depth d) grid step.  seq_ref holds this sample's
    (S_pad, D) activation in VMEM across all depth steps."""
    d = pl.program_id(1)
    s_pad, dim = seq_ref.shape
    hd = dim // num_heads
    scale = float(hd) ** -0.5

    # ---- depth step 0: one (S_pad, K) @ (K, D) patch-embed matmul.
    # Row 0 of xk is zero (cls slot), padding rows are zero; add_ref carries
    # cls_token+pos[0] / pos_kept+patch_bias / 0, so a single add finishes it.
    @pl.when(d == 0)
    def _():
        seq_ref[...] = (
            jnp.dot(xk_ref[0].astype(jnp.bfloat16), pw_ref[...],
                    preferred_element_type=jnp.float32)
            + add_ref[0]
        )

    # ---- transformer block `d` on this sample ------------------------------
    x = seq_ref[...]                                        # (S_pad, D) f32

    # --- attention (pre-norm), bf16 operands, f32 accumulation ---
    h1 = _layer_norm(x, ln1g_ref[0], ln1b_ref[0]).astype(jnp.bfloat16)
    q = jnp.dot(h1, wq_ref[0], preferred_element_type=jnp.float32) + bq_ref[0]
    k = jnp.dot(h1, wk_ref[0], preferred_element_type=jnp.float32) + bk_ref[0]
    v = jnp.dot(h1, wv_ref[0], preferred_element_type=jnp.float32) + bv_ref[0]

    # Padded key columns (>= seq_valid) must never be attended to; padded
    # query rows are garbage-but-finite and are sliced off in the wrapper.
    col = jax.lax.broadcasted_iota(jnp.int32, (s_pad, s_pad), 1)
    key_valid = col < seq_valid

    heads = []
    for hh in range(num_heads):
        # NOTE: at real widths (hd=64, D>=768) prefer head-major weight layout
        # or a batched dot_general to avoid sub-128-lane slices; at D=32 this
        # all lives in a single lane group anyway.
        qh = (q[:, hh * hd:(hh + 1) * hd] * scale).astype(jnp.bfloat16)
        kh = k[:, hh * hd:(hh + 1) * hd].astype(jnp.bfloat16)
        vh = v[:, hh * hd:(hh + 1) * hd].astype(jnp.bfloat16)
        s = jax.lax.dot_general(qh, kh, (((1,), (1,)), ((), ())),
                                preferred_element_type=jnp.float32)  # (S, S)
        s = jnp.where(key_valid, s, -1e30)
        s = s - jnp.max(s, axis=-1, keepdims=True)
        p = jnp.exp(s)                                              # f32
        # EUP reciprocal instead of a VALU divide.
        p = p * pl.reciprocal(jnp.sum(p, axis=-1, keepdims=True), approx=True)
        heads.append(jnp.dot(p.astype(jnp.bfloat16), vh,
                             preferred_element_type=jnp.float32))   # (S, hd)
    # One full-K projection matmul (concat heads) instead of H tiny K=hd dots.
    head_cat = jnp.concatenate(heads, axis=-1).astype(jnp.bfloat16)  # (S, D)
    attn = jnp.dot(head_cat, wproj_ref[0],
                   preferred_element_type=jnp.float32) + bproj_ref[0]
    x = x + attn

    # --- MLP (pre-norm) ---
    h2 = _layer_norm(x, ln2g_ref[0], ln2b_ref[0]).astype(jnp.bfloat16)
    m = jnp.dot(h2, wfc1_ref[0], preferred_element_type=jnp.float32) + bfc1_ref[0]
    # Exact erf GELU (timm default) kept for semantic fidelity.
    m = 0.5 * m * (1.0 + jax.lax.erf(m * float(1.0 / np.sqrt(2.0))))
    m = jnp.dot(m.astype(jnp.bfloat16), wfc2_ref[0],
                preferred_element_type=jnp.float32) + bfc2_ref[0]
    x = x + m

    seq_ref[...] = x        # stay resident in VMEM for the next depth step

    # ---- last depth step: final LayerNorm, lane-dense store ----------------
    @pl.when(d == pl.num_programs(1) - 1)
    def _():
        y = _layer_norm(x, ng_ref[...], nb_ref[...])
        d_pad = o_ref.shape[-1]
        if d_pad > dim:   # pad lanes to 128 -> one unmasked vst; sliced later
            y = jnp.concatenate(
                [y, jnp.zeros((s_pad, d_pad - dim), jnp.float32)], axis=-1)
        o_ref[0] = y


# ----------------------------- pallas_call wrapper ---------------------------
_BLOCK_PARAM_NAMES = ("ln1_g", "ln1_b", "wq", "wk", "wv", "bq", "bk", "bv",
                      "wproj", "bproj", "ln2_g", "ln2_b",
                      "wfc1", "bfc1", "wfc2", "bfc2")


def run_encoder(xk_pad, addk, params, seq_valid):
    Bn, s_pad, K = xk_pad.shape
    D = EMBED_DIM
    d_pad = _round_up(D, 128)

    stacked = [params[n] for n in _BLOCK_PARAM_NAMES]

    def fixed_spec(arr):
        rank = arr.ndim
        return pl.BlockSpec(arr.shape, lambda b, d, _r=rank: (0,) * _r)

    def depth_spec(arr):
        rank = arr.ndim
        return pl.BlockSpec((1,) + tuple(arr.shape[1:]),
                            lambda b, d, _r=rank: (d,) + (0,) * (_r - 1))

    in_specs = [
        pl.BlockSpec((1, s_pad, K), lambda b, d: (b, 0, 0)),
        pl.BlockSpec((1, s_pad, D), lambda b, d: (b, 0, 0)),
        fixed_spec(params["patch_w"]),
    ]
    # Stacked per-block weights: block d's slice selected by the depth index.
    in_specs += [depth_spec(w) for w in stacked]
    in_specs += [fixed_spec(params["norm_g"]), fixed_spec(params["norm_b"])]

    kernel = functools.partial(encoder_kernel, num_heads=NUM_HEADS,
                               seq_valid=seq_valid)
    return pl.pallas_call(
        kernel,
        out_shape=jax.ShapeDtypeStruct((Bn, s_pad, d_pad), jnp.float32),
        grid=(Bn, DEPTH),
        in_specs=in_specs,
        # Output block index constant across depth -> one HBM writeback per
        # sample; activation stays in VMEM in between.
        out_specs=pl.BlockSpec((1, s_pad, d_pad), lambda b, d: (b, 0, 0)),
        scratch_shapes=[pltpu.VMEM((s_pad, D), jnp.float32)],
        compiler_params=pltpu.CompilerParams(
            # Batch across TensorCores on v7x, depth serialized.
            # NOTE: batch-parallel re-streams per-layer weights once per shard;
            # bf16 weights keep that DMA cheap.  At real D, 48 MiB leaves
            # headroom for double-buffered bf16 weight slices on v5e/v6e/v7x.
            dimension_semantics=("parallel", "arbitrary"),
            vmem_limit_bytes=48 * 1024 * 1024),
    )(xk_pad, addk, params["patch_w"], *stacked,
      params["norm_g"], params["norm_b"])


# ----------------------------- parameter init (deterministic) -----------------
def _xavier_uniform(key, fan_in, fan_out):
    bound = float(np.sqrt(6.0 / (fan_in + fan_out)))
    return jax.random.uniform(key, (fan_in, fan_out), jnp.float32, -bound, bound)


def init_params(key):
    D = EMBED_DIM
    K = IN_CHANS * PATCH_SIZE[0] * PATCH_SIZE[1] * PATCH_SIZE[2]
    hidden = int(D * MLP_RATIO)
    gt = NUM_FRAMES // PATCH_SIZE[0]
    gh = IMG // PATCH_SIZE[1]
    gw = IMG // PATCH_SIZE[2]

    k_patch, k_pbias, k_cls, k_blocks = jax.random.split(key, 4)
    params = {}
    # MXU-facing weights stored in bf16; biases / LN params / residual in f32.
    params["patch_w"] = _xavier_uniform(k_patch, K, D).astype(jnp.bfloat16)
    pb_bound = 1.0 / float(np.sqrt(K))
    params["patch_b"] = jax.random.uniform(k_pbias, (1, D), jnp.float32,
                                           -pb_bound, pb_bound)
    params["cls_token"] = 0.02 * jax.random.normal(k_cls, (1, 1, D), jnp.float32)
    params["pos_embed"] = jnp.asarray(
        get_3d_sincos_pos_embed(D, (gt, gh, gw), add_cls_token=True),
        dtype=jnp.float32)[None]  # (1, L+1, D)

    wq, wk, wv, wproj, wfc1, wfc2 = [], [], [], [], [], []
    bkeys = jax.random.split(k_blocks, DEPTH)
    for i in range(DEPTH):
        k1, k2, k3, k4 = jax.random.split(bkeys[i], 4)
        # Fused-qkv xavier (preserves PyTorch fan stats), then split columns so
        # the kernel can run three full-width Q/K/V matmuls.
        wqkv = _xavier_uniform(k1, D, 3 * D)
        wq.append(wqkv[:, :D])
        wk.append(wqkv[:, D:2 * D])
        wv.append(wqkv[:, 2 * D:])
        wproj.append(_xavier_uniform(k2, D, D))
        wfc1.append(_xavier_uniform(k3, D, hidden))
        wfc2.append(_xavier_uniform(k4, hidden, D))

    def stack_bf16(lst):
        return jnp.stack(lst).astype(jnp.bfloat16)

    params["wq"] = stack_bf16(wq)
    params["wk"] = stack_bf16(wk)
    params["wv"] = stack_bf16(wv)
    params["wproj"] = stack_bf16(wproj)
    params["wfc1"] = stack_bf16(wfc1)
    params["wfc2"] = stack_bf16(wfc2)
    params["bq"] = jnp.zeros((DEPTH, 1, D), jnp.float32)
    params["bk"] = jnp.zeros((DEPTH, 1, D), jnp.float32)
    params["bv"] = jnp.zeros((DEPTH, 1, D), jnp.float32)
    params["bproj"] = jnp.zeros((DEPTH, 1, D), jnp.float32)
    params["bfc1"] = jnp.zeros((DEPTH, 1, hidden), jnp.float32)
    params["bfc2"] = jnp.zeros((DEPTH, 1, D), jnp.float32)
    params["ln1_g"] = jnp.ones((DEPTH, 1, D), jnp.float32)
    params["ln1_b"] = jnp.zeros((DEPTH, 1, D), jnp.float32)
    params["ln2_g"] = jnp.ones((DEPTH, 1, D), jnp.float32)
    params["ln2_b"] = jnp.zeros((DEPTH, 1, D), jnp.float32)
    params["norm_g"] = jnp.ones((1, D), jnp.float32)
    params["norm_b"] = jnp.zeros((1, D), jnp.float32)
    return params


# ----------------------------- forward pass ----------------------------------
@functools.partial(jax.jit, static_argnames=("mask_ratio",))
def prithvi_vit_forward(params, x, noise, mask_ratio):
    """x: (B, C, T, H, W) float32 (NCTHW, matching PyTorch Conv3d input)."""
    Bn, C, T, H, W = x.shape
    pt, ph, pw_ = PATCH_SIZE
    gt, gh, gw = T // pt, H // ph, W // pw_
    L = gt * gh * gw
    K = C * pt * ph * pw_
    D = EMBED_DIM

    # Patchify (layout glue): per-patch flatten order (C, pt, ph, pw), patch
    # order (t, h, w) -- identical to Conv3d + flatten(2).transpose(1, 2).
    xp = x.reshape(Bn, C, gt, pt, gh, ph, gw, pw_)
    xp = xp.transpose(0, 2, 4, 6, 1, 3, 5, 7).reshape(Bn, L, K)

    # Random masking bookkeeping.
    # TODO(synk): per-sample argsort shuffle / restore indices stay in plain JAX.
    len_keep = int(L * (1 - mask_ratio))
    ids_shuffle = jnp.argsort(noise, axis=1)
    ids_restore = jnp.argsort(ids_shuffle, axis=1)
    ids_keep = ids_shuffle[:, :len_keep]
    mask = jnp.ones((Bn, L), jnp.float32).at[:, :len_keep].set(0.0)
    mask = jnp.take_along_axis(mask, ids_restore, axis=1)

    # Gather only the *kept* raw patches (and their pos rows) before embedding:
    # the patch embed is a per-token linear, so this is exactly equivalent to
    # "embed everything then mask" but never materializes the full token tensor.
    xk = jnp.take_along_axis(xp, ids_keep[:, :, None], axis=1)      # (B, keep, K)
    pos = params["pos_embed"][0]                                    # (L+1, D)
    posk = jnp.take(pos[1:], ids_keep, axis=0)                      # (B, keep, D)
    cls_row = params["cls_token"][0] + pos[:1]                      # (1, D)

    S = 1 + len_keep
    s_pad = _round_up(S, 8)          # sublane-aligned per-sample slab

    # Packed kernel inputs:
    #   xk_pad row 0 = zeros (cls slot), rows 1..S-1 = kept patches, rest 0.
    #   addk   row 0 = cls_token + pos[0], rows 1..S-1 = pos_kept + patch_bias,
    #          padding rows 0 (so padded rows stay finite through the blocks).
    xk_pad = jnp.zeros((Bn, s_pad, K), jnp.float32)
    xk_pad = xk_pad.at[:, 1:S, :].set(xk)
    addk = jnp.zeros((Bn, s_pad, D), jnp.float32)
    addk = addk.at[:, 0, :].set(jnp.broadcast_to(cls_row, (Bn, D)))
    addk = addk.at[:, 1:S, :].set(posk + params["patch_b"])

    out = run_encoder(xk_pad, addk, params, S)      # (B, S_pad, D_pad)
    seq = out[:, :S, :D]                            # strip row/lane padding
    return seq, mask, ids_restore


# ----------------------------- main -------------------------------------------
if __name__ == "__main__":
    key = jax.random.PRNGKey(0)
    kx, kn, kp = jax.random.split(key, 3)

    x = jax.random.normal(kx, (B, IN_CHANS, NUM_FRAMES, IMG, IMG), jnp.float32)
    params = init_params(kp)

    L = (NUM_FRAMES // PATCH_SIZE[0]) * (IMG // PATCH_SIZE[1]) * (IMG // PATCH_SIZE[2])
    noise = jax.random.uniform(kn, (B, L), jnp.float32)

    out, mask, ids_restore = prithvi_vit_forward(params, x, noise,
                                                 mask_ratio=MASK_RATIO)
    out = jax.block_until_ready(out)
    mask = jax.block_until_ready(mask)
    ids_restore = jax.block_until_ready(ids_restore)

    len_keep = int(L * (1 - MASK_RATIO))
    assert out.shape == (B, 1 + len_keep, EMBED_DIM)
    assert mask.shape == (B, L)
    assert ids_restore.shape == (B, L)
    assert bool(jnp.all(jnp.isfinite(out)))
    print("KERNEL_OK")
</pallas_src>

<mosaic_0001>
module attributes {stable_mosaic.version = 11 : i64} {
  func.func @encoder_kernel(%arg0: i32, %arg1: i32, %arg2: memref<1x8x256xf32, #tpu.memory_space<vmem>>, %arg3: memref<1x8x32xf32, #tpu.memory_space<vmem>>, %arg4: memref<256x32xbf16, #tpu.memory_space<vmem>>, %arg5: memref<1x1x32xf32, #tpu.memory_space<vmem>>, %arg6: memref<1x1x32xf32, #tpu.memory_space<vmem>>, %arg7: memref<1x32x32xbf16, #tpu.memory_space<vmem>>, %arg8: memref<1x32x32xbf16, #tpu.memory_space<vmem>>, %arg9: memref<1x32x32xbf16, #tpu.memory_space<vmem>>, %arg10: memref<1x1x32xf32, #tpu.memory_space<vmem>>, %arg11: memref<1x1x32xf32, #tpu.memory_space<vmem>>, %arg12: memref<1x1x32xf32, #tpu.memory_space<vmem>>, %arg13: memref<1x32x32xbf16, #tpu.memory_space<vmem>>, %arg14: memref<1x1x32xf32, #tpu.memory_space<vmem>>, %arg15: memref<1x1x32xf32, #tpu.memory_space<vmem>>, %arg16: memref<1x1x32xf32, #tpu.memory_space<vmem>>, %arg17: memref<1x32x128xbf16, #tpu.memory_space<vmem>>, %arg18: memref<1x1x128xf32, #tpu.memory_space<vmem>>, %arg19: memref<1x128x32xbf16, #tpu.memory_space<vmem>>, %arg20: memref<1x1x32xf32, #tpu.memory_space<vmem>>, %arg21: memref<1x32xf32, #tpu.memory_space<vmem>>, %arg22: memref<1x32xf32, #tpu.memory_space<vmem>>, %arg23: memref<1x8x128xf32, #tpu.memory_space<vmem>>, %arg24: memref<8x32xf32, #tpu.memory_space<vmem>>) attributes {dimension_semantics = [#tpu.dimension_semantics<parallel>, #tpu.dimension_semantics<arbitrary>], iteration_bounds = array<i64: 2, 2>, scalar_prefetch = 0 : i64, scratch_operands = 1 : i64, tpu.core_type = #tpu.core_type<tc>, window_params = [{transform_indices = @transform_0, window_bounds = array<i64: 1, 8, 256>}, {transform_indices = @transform_1, window_bounds = array<i64: 1, 8, 32>}, {pipeline_mode = #tpu.pipeline_mode<synchronous>, transform_indices = @transform_2, window_bounds = array<i64: 256, 32>}, {transform_indices = @transform_3, window_bounds = array<i64: 1, 1, 32>}, {transform_indices = @transform_4, window_bounds = array<i64: 1, 1, 32>}, {transform_indices = @transform_5, window_bounds = array<i64: 1, 32, 32>}, {transform_indices = @transform_6, window_bounds = array<i64: 1, 32, 32>}, {transform_indices = @transform_7, window_bounds = array<i64: 1, 32, 32>}, {transform_indices = @transform_8, window_bounds = array<i64: 1, 1, 32>}, {transform_indices = @transform_9, window_bounds = array<i64: 1, 1, 32>}, {transform_indices = @transform_10, window_bounds = array<i64: 1, 1, 32>}, {transform_indices = @transform_11, window_bounds = array<i64: 1, 32, 32>}, {transform_indices = @transform_12, window_bounds = array<i64: 1, 1, 32>}, {transform_indices = @transform_13, window_bounds = array<i64: 1, 1, 32>}, {transform_indices = @transform_14, window_bounds = array<i64: 1, 1, 32>}, {transform_indices = @transform_15, window_bounds = array<i64: 1, 32, 128>}, {transform_indices = @transform_16, window_bounds = array<i64: 1, 1, 128>}, {transform_indices = @transform_17, window_bounds = array<i64: 1, 128, 32>}, {transform_indices = @transform_18, window_bounds = array<i64: 1, 1, 32>}, {pipeline_mode = #tpu.pipeline_mode<synchronous>, transform_indices = @transform_19, window_bounds = array<i64: 1, 32>}, {pipeline_mode = #tpu.pipeline_mode<synchronous>, transform_indices = @transform_20, window_bounds = array<i64: 1, 32>}, {transform_indices = @transform_21, window_bounds = array<i64: 1, 8, 128>}]} {
    %c0_i32 = arith.constant 0 : i32
    %0 = arith.cmpi eq, %arg1, %c0_i32 : i32
    %1 = arith.extui %0 : i1 to i32
    %c0_i32_0 = arith.constant 0 : i32
    %2 = arith.cmpi ne, %1, %c0_i32_0 : i32
    scf.if %2 {
      %c0_95 = arith.constant 0 : index
      %c0_96 = arith.constant 0 : index
      %c0_97 = arith.constant 0 : index
      %212 = vector.load %arg2[%c0_95, %c0_96, %c0_97] : memref<1x8x256xf32, #tpu.memory_space<vmem>>, vector<1x8x256xf32>
      %213 = vector.shape_cast %212 : vector<1x8x256xf32> to vector<8x256xf32>
      %214 = arith.truncf %213 : vector<8x256xf32> to vector<8x256xbf16>
      %c0_98 = arith.constant 0 : index
      %c0_99 = arith.constant 0 : index
      %215 = vector.load %arg4[%c0_98, %c0_99] : memref<256x32xbf16, #tpu.memory_space<vmem>>, vector<256x32xbf16>
      %cst_100 = arith.constant dense<0.000000e+00> : vector<8x32xf32>
      %216 = tpu.matmul %214, %215, %cst_100 {dimension_numbers = #tpu.dot_dimension_numbers<[1], [0], [0], [1], [0, 0, 1, 1], [], []>} : vector<8x256xbf16>, vector<256x32xbf16>, vector<8x32xf32> -> vector<8x32xf32>
      %c0_101 = arith.constant 0 : index
      %c0_102 = arith.constant 0 : index
      %c0_103 = arith.constant 0 : index
      %217 = vector.load %arg3[%c0_101, %c0_102, %c0_103] : memref<1x8x32xf32, #tpu.memory_space<vmem>>, vector<1x8x32xf32>
      %218 = vector.shape_cast %217 : vector<1x8x32xf32> to vector<8x32xf32>
      %219 = arith.addf %216, %218 : vector<8x32xf32>
      %c0_104 = arith.constant 0 : index
      %c0_105 = arith.constant 0 : index
      %220 = vector.load %arg24[%c0_104, %c0_105] : memref<8x32xf32, #tpu.memory_space<vmem>>, vector<8x32xf32>
      tpu.vector_store %arg24[%c0_104, %c0_105], %219 {strides = array<i32>} : memref<8x32xf32, #tpu.memory_space<vmem>>, vector<8x32xf32>,
    } else {
    }
    %c0 = arith.constant 0 : index
    %c0_1 = arith.constant 0 : index
    %3 = vector.load %arg24[%c0, %c0_1] : memref<8x32xf32, #tpu.memory_space<vmem>>, vector<8x32xf32>
    %c0_2 = arith.constant 0 : index
    %c0_3 = arith.constant 0 : index
    %c0_4 = arith.constant 0 : index
    %4 = vector.load %arg5[%c0_2, %c0_3, %c0_4] : memref<1x1x32xf32, #tpu.memory_space<vmem>>, vector<1x1x32xf32>
    %5 = vector.shape_cast %4 : vector<1x1x32xf32> to vector<1x32xf32>
    %c0_5 = arith.constant 0 : index
    %c0_6 = arith.constant 0 : index
    %c0_7 = arith.constant 0 : index
    %6 = vector.load %arg6[%c0_5, %c0_6, %c0_7] : memref<1x1x32xf32, #tpu.memory_space<vmem>>, vector<1x1x32xf32>
    %7 = vector.shape_cast %6 : vector<1x1x32xf32> to vector<1x32xf32>
    %cst = arith.constant dense<0.000000e+00> : vector<8xf32>
    %8 = vector.multi_reduction <add>, %3, %cst [1] : vector<8x32xf32> to vector<8xf32>
    %9 = vector.shape_cast %8 : vector<8xf32> to vector<8x1xf32>
    %cst_8 = arith.constant 3.200000e+01 : f32
    %10 = vector.broadcast %cst_8 : f32 to vector<8x1xf32>
    %11 = arith.divf %9, %10 : vector<8x1xf32>
    %12 = vector.broadcast %11 : vector<8x1xf32> to vector<8x32xf32>
    %13 = arith.subf %3, %12 : vector<8x32xf32>
    %14 = arith.mulf %13, %13 : vector<8x32xf32>
    %cst_9 = arith.constant dense<0.000000e+00> : vector<8xf32>
    %15 = vector.multi_reduction <add>, %14, %cst_9 [1] : vector<8x32xf32> to vector<8xf32>
    %16 = vector.shape_cast %15 : vector<8xf32> to vector<8x1xf32>
    %cst_10 = arith.constant 3.200000e+01 : f32
    %17 = vector.broadcast %cst_10 : f32 to vector<8x1xf32>
    %18 = arith.divf %16, %17 : vector<8x1xf32>
    %19 = vector.broadcast %11 : vector<8x1xf32> to vector<8x32xf32>
    %20 = arith.subf %3, %19 : vector<8x32xf32>
    %cst_11 = arith.constant 9.99999997E-7 : f32
    %21 = vector.broadcast %cst_11 : f32 to vector<8x1xf32>
    %22 = arith.addf %18, %21 : vector<8x1xf32>
    %23 = math.rsqrt %22 : vector<8x1xf32>
    %24 = vector.broadcast %23 : vector<8x1xf32> to vector<8x32xf32>
    %25 = arith.mulf %20, %24 : vector<8x32xf32>
    %26 = vector.broadcast %5 : vector<1x32xf32> to vector<8x32xf32>
    %27 = arith.mulf %25, %26 : vector<8x32xf32>
    %28 = vector.broadcast %7 : vector<1x32xf32> to vector<8x32xf32>
    %29 = arith.addf %27, %28 : vector<8x32xf32>
    %30 = arith.truncf %29 : vector<8x32xf32> to vector<8x32xbf16>
    %c0_12 = arith.constant 0 : index
    %c0_13 = arith.constant 0 : index
    %c0_14 = arith.constant 0 : index
    %31 = vector.load %arg7[%c0_12, %c0_13, %c0_14] : memref<1x32x32xbf16, #tpu.memory_space<vmem>>, vector<1x32x32xbf16>
    %32 = vector.shape_cast %31 : vector<1x32x32xbf16> to vector<32x32xbf16>
    %cst_15 = arith.constant dense<0.000000e+00> : vector<8x32xf32>
    %33 = tpu.matmul %30, %32, %cst_15 {dimension_numbers = #tpu.dot_dimension_numbers<[1], [0], [0], [1], [0, 0, 1, 1], [], []>} : vector<8x32xbf16>, vector<32x32xbf16>, vector<8x32xf32> -> vector<8x32xf32>
    %c0_16 = arith.constant 0 : index
    %c0_17 = arith.constant 0 : index
    %c0_18 = arith.constant 0 : index
    %34 = vector.load %arg10[%c0_16, %c0_17, %c0_18] : memref<1x1x32xf32, #tpu.memory_space<vmem>>, vector<1x1x32xf32>
    %35 = vector.shape_cast %34 : vector<1x1x32xf32> to vector<1x32xf32>
    %36 = vector.broadcast %35 : vector<1x32xf32> to vector<8x32xf32>
    %37 = arith.addf %33, %36 : vector<8x32xf32>
    %c0_19 = arith.constant 0 : index
    %c0_20 = arith.constant 0 : index
    %c0_21 = arith.constant 0 : index
    %38 = vector.load %arg8[%c0_19, %c0_20, %c0_21] : memref<1x32x32xbf16, #tpu.memory_space<vmem>>, vector<1x32x32xbf16>
    %39 = vector.shape_cast %38 : vector<1x32x32xbf16> to vector<32x32xbf16>
    %cst_22 = arith.constant dense<0.000000e+00> : vector<8x32xf32>
    %40 = tpu.matmul %30, %39, %cst_22 {dimension_numbers = #tpu.dot_dimension_numbers<[1], [0], [0], [1], [0, 0, 1, 1], [], []>} : vector<8x32xbf16>, vector<32x32xbf16>, vector<8x32xf32> -> vector<8x32xf32>
    %c0_23 = arith.constant 0 : index
    %c0_24 = arith.constant 0 : index
    %c0_25 = arith.constant 0 : index
    %41 = vector.load %arg11[%c0_23, %c0_24, %c0_25] : memref<1x1x32xf32, #tpu.memory_space<vmem>>, vector<1x1x32xf32>
    %42 = vector.shape_cast %41 : vector<1x1x32xf32> to vector<1x32xf32>
    %43 = vector.broadcast %42 : vector<1x32xf32> to vector<8x32xf32>
    %44 = arith.addf %40, %43 : vector<8x32xf32>
    %c0_26 = arith.constant 0 : index
    %c0_27 = arith.constant 0 : index
    %c0_28 = arith.constant 0 : index
    %45 = vector.load %arg9[%c0_26, %c0_27, %c0_28] : memref<1x32x32xbf16, #tpu.memory_space<vmem>>, vector<1x32x32xbf16>
    %46 = vector.shape_cast %45 : vector<1x32x32xbf16> to vector<32x32xbf16>
    %cst_29 = arith.constant dense<0.000000e+00> : vector<8x32xf32>
    %47 = tpu.matmul %30, %46, %cst_29 {dimension_numbers = #tpu.dot_dimension_numbers<[1], [0], [0], [1], [0, 0, 1, 1], [], []>} : vector<8x32xbf16>, vector<32x32xbf16>, vector<8x32xf32> -> vector<8x32xf32>
    %c0_30 = arith.constant 0 : index
    %c0_31 = arith.constant 0 : index
    %c0_32 = arith.constant 0 : index
    %48 = vector.load %arg12[%c0_30, %c0_31, %c0_32] : memref<1x1x32xf32, #tpu.memory_space<vmem>>, vector<1x1x32xf32>
    %49 = vector.shape_cast %48 : vector<1x1x32xf32> to vector<1x32xf32>
    %50 = vector.broadcast %49 : vector<1x32xf32> to vector<8x32xf32>
    %51 = arith.addf %47, %50 : vector<8x32xf32>
    %52 = tpu.iota {dimensions = array<i32: 1>} : vector<8x8xi32>
    %c3_i32 = arith.constant 3 : i32
    %53 = vector.broadcast %c3_i32 : i32 to vector<8x8xi32>
    %54 = arith.cmpi slt, %52, %53 : vector<8x8xi32>
    %55 = vector.extract_strided_slice %37 {offsets = [0, 0], sizes = [8, 8], strides = [1, 1]} : vector<8x32xf32> to vector<8x8xf32>
    %cst_33 = arith.constant 0.353553385 : f32
    %56 = vector.broadcast %cst_33 : f32 to vector<8x8xf32>
    %57 = arith.mulf %55, %56 : vector<8x8xf32>
    %58 = arith.truncf %57 : vector<8x8xf32> to vector<8x8xbf16>
    %59 = vector.extract_strided_slice %44 {offsets = [0, 0], sizes = [8, 8], strides = [1, 1]} : vector<8x32xf32> to vector<8x8xf32>
    %60 = arith.truncf %59 : vector<8x8xf32> to vector<8x8xbf16>
    %61 = vector.extract_strided_slice %51 {offsets = [0, 0], sizes = [8, 8], strides = [1, 1]} : vector<8x32xf32> to vector<8x8xf32>
    %62 = arith.truncf %61 : vector<8x8xf32> to vector<8x8xbf16>
    %cst_34 = arith.constant dense<0.000000e+00> : vector<8x8xf32>
    %63 = tpu.matmul %58, %60, %cst_34 {dimension_numbers = #tpu.dot_dimension_numbers<[1], [1], [0], [0], [0, 0, 1, 0], [], []>} : vector<8x8xbf16>, vector<8x8xbf16>, vector<8x8xf32> -> vector<8x8xf32>
    %cst_35 = arith.constant -1.000000e+30 : f32
    %64 = vector.broadcast %cst_35 : f32 to vector<8x8xf32>
    %65 = arith.select %54, %63, %64 : vector<8x8xi1>, vector<8x8xf32>
    %cst_36 = arith.constant dense<0xFF800000> : vector<8xf32>
    %66 = vector.multi_reduction <maximumf>, %65, %cst_36 [1] : vector<8x8xf32> to vector<8xf32>
    %67 = vector.shape_cast %66 : vector<8xf32> to vector<8x1xf32>
    %68 = vector.broadcast %67 : vector<8x1xf32> to vector<8x8xf32>
    %69 = arith.subf %65, %68 : vector<8x8xf32>
    %70 = math.exp %69 : vector<8x8xf32>
    %cst_37 = arith.constant dense<0.000000e+00> : vector<8xf32>
    %71 = vector.multi_reduction <add>, %70, %cst_37 [1] : vector<8x8xf32> to vector<8xf32>
    %72 = vector.shape_cast %71 : vector<8xf32> to vector<8x1xf32>
    %73 = tpu.reciprocal %72 {approx = true} : vector<8x1xf32> -> vector<8x1xf32>
    %74 = vector.broadcast %73 : vector<8x1xf32> to vector<8x8xf32>
    %75 = arith.mulf %70, %74 : vector<8x8xf32>
    %76 = arith.truncf %75 : vector<8x8xf32> to vector<8x8xbf16>
    %cst_38 = arith.constant dense<0.000000e+00> : vector<8x8xf32>
    %77 = tpu.matmul %76, %62, %cst_38 {dimension_numbers = #tpu.dot_dimension_numbers<[1], [0], [0], [1], [0, 0, 1, 1], [], []>} : vector<8x8xbf16>, vector<8x8xbf16>, vector<8x8xf32> -> vector<8x8xf32>
    %78 = vector.extract_strided_slice %37 {offsets = [0, 8], sizes = [8, 8], strides = [1, 1]} : vector<8x32xf32> to vector<8x8xf32>
    %cst_39 = arith.constant 0.353553385 : f32
    %79 = vector.broadcast %cst_39 : f32 to vector<8x8xf32>
    %80 = arith.mulf %78, %79 : vector<8x8xf32>
    %81 = arith.truncf %80 : vector<8x8xf32> to vector<8x8xbf16>
    %82 = vector.extract_strided_slice %44 {offsets = [0, 8], sizes = [8, 8], strides = [1, 1]} : vector<8x32xf32> to vector<8x8xf32>
    %83 = arith.truncf %82 : vector<8x8xf32> to vector<8x8xbf16>
    %84 = vector.extract_strided_slice %51 {offsets = [0, 8], sizes = [8, 8], strides = [1, 1]} : vector<8x32xf32> to vector<8x8xf32>
    %85 = arith.truncf %84 : vector<8x8xf32> to vector<8x8xbf16>
    %cst_40 = arith.constant dense<0.000000e+00> : vector<8x8xf32>
    %86 = tpu.matmul %81, %83, %cst_40 {dimension_numbers = #tpu.dot_dimension_numbers<[1], [1], [0], [0], [0, 0, 1, 0], [], []>} : vector<8x8xbf16>, vector<8x8xbf16>, vector<8x8xf32> -> vector<8x8xf32>
    %cst_41 = arith.constant -1.000000e+30 : f32
    %87 = vector.broadcast %cst_41 : f32 to vector<8x8xf32>
    %88 = arith.select %54, %86, %87 : vector<8x8xi1>, vector<8x8xf32>
    %cst_42 = arith.constant dense<0xFF800000> : vector<8xf32>
    %89 = vector.multi_reduction <maximumf>, %88, %cst_42 [1] : vector<8x8xf32> to vector<8xf32>
    %90 = vector.shape_cast %89 : vector<8xf32> to vector<8x1xf32>
    %91 = vector.broadcast %90 : vector<8x1xf32> to vector<8x8xf32>
    %92 = arith.subf %88, %91 : vector<8x8xf32>
    %93 = math.exp %92 : vector<8x8xf32>
    %cst_43 = arith.constant dense<0.000000e+00> : vector<8xf32>
    %94 = vector.multi_reduction <add>, %93, %cst_43 [1] : vector<8x8xf32> to vector<8xf32>
    %95 = vector.shape_cast %94 : vector<8xf32> to vector<8x1xf32>
    %96 = tpu.reciprocal %95 {approx = true} : vector<8x1xf32> -> vector<8x1xf32>
    %97 = vector.broadcast %96 : vector<8x1xf32> to vector<8x8xf32>
    %98 = arith.mulf %93, %97 : vector<8x8xf32>
    %99 = arith.truncf %98 : vector<8x8xf32> to vector<8x8xbf16>
    %cst_44 = arith.constant dense<0.000000e+00> : vector<8x8xf32>
    %100 = tpu.matmul %99, %85, %cst_44 {dimension_numbers = #tpu.dot_dimension_numbers<[1], [0], [0], [1], [0, 0, 1, 1], [], []>} : vector<8x8xbf16>, vector<8x8xbf16>, vector<8x8xf32> -> vector<8x8xf32>
    %101 = vector.extract_strided_slice %37 {offsets = [0, 16], sizes = [8, 8], strides = [1, 1]} : vector<8x32xf32> to vector<8x8xf32>
    %cst_45 = arith.constant 0.353553385 : f32
    %102 = vector.broadcast %cst_45 : f32 to vector<8x8xf32>
    %103 = arith.mulf %101, %102 : vector<8x8xf32>
    %104 = arith.truncf %103 : vector<8x8xf32> to vector<8x8xbf16>
    %105 = vector.extract_strided_slice %44 {offsets = [0, 16], sizes = [8, 8], strides = [1, 1]} : vector<8x32xf32> to vector<8x8xf32>
    %106 = arith.truncf %105 : vector<8x8xf32> to vector<8x8xbf16>
    %107 = vector.extract_strided_slice %51 {offsets = [0, 16], sizes = [8, 8], strides = [1, 1]} : vector<8x32xf32> to vector<8x8xf32>
    %108 = arith.truncf %107 : vector<8x8xf32> to vector<8x8xbf16>
    %cst_46 = arith.constant dense<0.000000e+00> : vector<8x8xf32>
    %109 = tpu.matmul %104, %106, %cst_46 {dimension_numbers = #tpu.dot_dimension_numbers<[1], [1], [0], [0], [0, 0, 1, 0], [], []>} : vector<8x8xbf16>, vector<8x8xbf16>, vector<8x8xf32> -> vector<8x8xf32>
    %cst_47 = arith.constant -1.000000e+30 : f32
    %110 = vector.broadcast %cst_47 : f32 to vector<8x8xf32>
    %111 = arith.select %54, %109, %110 : vector<8x8xi1>, vector<8x8xf32>
    %cst_48 = arith.constant dense<0xFF800000> : vector<8xf32>
    %112 = vector.multi_reduction <maximumf>, %111, %cst_48 [1] : vector<8x8xf32> to vector<8xf32>
    %113 = vector.shape_cast %112 : vector<8xf32> to vector<8x1xf32>
    %114 = vector.broadcast %113 : vector<8x1xf32> to vector<8x8xf32>
    %115 = arith.subf %111, %114 : vector<8x8xf32>
    %116 = math.exp %115 : vector<8x8xf32>
    %cst_49 = arith.constant dense<0.000000e+00> : vector<8xf32>
    %117 = vector.multi_reduction <add>, %116, %cst_49 [1] : vector<8x8xf32> to vector<8xf32>
    %118 = vector.shape_cast %117 : vector<8xf32> to vector<8x1xf32>
    %119 = tpu.reciprocal %118 {approx = true} : vector<8x1xf32> -> vector<8x1xf32>
    %120 = vector.broadcast %119 : vector<8x1xf32> to vector<8x8xf32>
    %121 = arith.mulf %116, %120 : vector<8x8xf32>
    %122 = arith.truncf %121 : vector<8x8xf32> to vector<8x8xbf16>
    %cst_50 = arith.constant dense<0.000000e+00> : vector<8x8xf32>
    %123 = tpu.matmul %122, %108, %cst_50 {dimension_numbers = #tpu.dot_dimension_numbers<[1], [0], [0], [1], [0, 0, 1, 1], [], []>} : vector<8x8xbf16>, vector<8x8xbf16>, vector<8x8xf32> -> vector<8x8xf32>
    %124 = vector.extract_strided_slice %37 {offsets = [0, 24], sizes = [8, 8], strides = [1, 1]} : vector<8x32xf32> to vector<8x8xf32>
    %cst_51 = arith.constant 0.353553385 : f32
    %125 = vector.broadcast %cst_51 : f32 to vector<8x8xf32>
    %126 = arith.mulf %124, %125 : vector<8x8xf32>
    %127 = arith.truncf %126 : vector<8x8xf32> to vector<8x8xbf16>
    %128 = vector.extract_strided_slice %44 {offsets = [0, 24], sizes = [8, 8], strides = [1, 1]} : vector<8x32xf32> to vector<8x8xf32>
    %129 = arith.truncf %128 : vector<8x8xf32> to vector<8x8xbf16>
    %130 = vector.extract_strided_slice %51 {offsets = [0, 24], sizes = [8, 8], strides = [1, 1]} : vector<8x32xf32> to vector<8x8xf32>
    %131 = arith.truncf %130 : vector<8x8xf32> to vector<8x8xbf16>
    %cst_52 = arith.constant dense<0.000000e+00> : vector<8x8xf32>
    %132 = tpu.matmul %127, %129, %cst_52 {dimension_numbers = #tpu.dot_dimension_numbers<[1], [1], [0], [0], [0, 0, 1, 0], [], []>} : vector<8x8xbf16>, vector<8x8xbf16>, vector<8x8xf32> -> vector<8x8xf32>
    %cst_53 = arith.constant -1.000000e+30 : f32
    %133 = vector.broadcast %cst_53 : f32 to vector<8x8xf32>
    %134 = arith.select %54, %132, %133 : vector<8x8xi1>, vector<8x8xf32>
    %cst_54 = arith.constant dense<0xFF800000> : vector<8xf32>
    %135 = vector.multi_reduction <maximumf>, %134, %cst_54 [1] : vector<8x8xf32> to vector<8xf32>
    %136 = vector.shape_cast %135 : vector<8xf32> to vector<8x1xf32>
    %137 = vector.broadcast %136 : vector<8x1xf32> to vector<8x8xf32>
    %138 = arith.subf %134, %137 : vector<8x8xf32>
    %139 = math.exp %138 : vector<8x8xf32>
    %cst_55 = arith.constant dense<0.000000e+00> : vector<8xf32>
    %140 = vector.multi_reduction <add>, %139, %cst_55 [1] : vector<8x8xf32> to vector<8xf32>
    %141 = vector.shape_cast %140 : vector<8xf32> to vector<8x1xf32>
    %142 = tpu.reciprocal %141 {approx = true} : vector<8x1xf32> -> vector<8x1xf32>
    %143 = vector.broadcast %142 : vector<8x1xf32> to vector<8x8xf32>
    %144 = arith.mulf %139, %143 : vector<8x8xf32>
    %145 = arith.truncf %144 : vector<8x8xf32> to vector<8x8xbf16>
    %cst_56 = arith.constant dense<0.000000e+00> : vector<8x8xf32>
    %146 = tpu.matmul %145, %131, %cst_56 {dimension_numbers = #tpu.dot_dimension_numbers<[1], [0], [0], [1], [0, 0, 1, 1], [], []>} : vector<8x8xbf16>, vector<8x8xbf16>, vector<8x8xf32> -> vector<8x8xf32>
    %147 = tpu.concatenate %77, %100, %123, %146 in 1 : vector<8x8xf32>, vector<8x8xf32>, vector<8x8xf32>, vector<8x8xf32> -> vector<8x32xf32>
    %148 = arith.truncf %147 : vector<8x32xf32> to vector<8x32xbf16>
    %c0_57 = arith.constant 0 : index
    %c0_58 = arith.constant 0 : index
    %c0_59 = arith.constant 0 : index
    %149 = vector.load %arg13[%c0_57, %c0_58, %c0_59] : memref<1x32x32xbf16, #tpu.memory_space<vmem>>, vector<1x32x32xbf16>
    %150 = vector.shape_cast %149 : vector<1x32x32xbf16> to vector<32x32xbf16>
    %cst_60 = arith.constant dense<0.000000e+00> : vector<8x32xf32>
    %151 = tpu.matmul %148, %150, %cst_60 {dimension_numbers = #tpu.dot_dimension_numbers<[1], [0], [0], [1], [0, 0, 1, 1], [], []>} : vector<8x32xbf16>, vector<32x32xbf16>, vector<8x32xf32> -> vector<8x32xf32>
    %c0_61 = arith.constant 0 : index
    %c0_62 = arith.constant 0 : index
    %c0_63 = arith.constant 0 : index
    %152 = vector.load %arg14[%c0_61, %c0_62, %c0_63] : memref<1x1x32xf32, #tpu.memory_space<vmem>>, vector<1x1x32xf32>
    %153 = vector.shape_cast %152 : vector<1x1x32xf32> to vector<1x32xf32>
    %154 = vector.broadcast %153 : vector<1x32xf32> to vector<8x32xf32>
    %155 = arith.addf %151, %154 : vector<8x32xf32>
    %156 = arith.addf %3, %155 : vector<8x32xf32>
    %c0_64 = arith.constant 0 : index
    %c0_65 = arith.constant 0 : index
    %c0_66 = arith.constant 0 : index
    %157 = vector.load %arg15[%c0_64, %c0_65, %c0_66] : memref<1x1x32xf32, #tpu.memory_space<vmem>>, vector<1x1x32xf32>
    %158 = vector.shape_cast %157 : vector<1x1x32xf32> to vector<1x32xf32>
    %c0_67 = arith.constant 0 : index
    %c0_68 = arith.constant 0 : index
    %c0_69 = arith.constant 0 : index
    %159 = vector.load %arg16[%c0_67, %c0_68, %c0_69] : memref<1x1x32xf32, #tpu.memory_space<vmem>>, vector<1x1x32xf32>
    %160 = vector.shape_cast %159 : vector<1x1x32xf32> to vector<1x32xf32>
    %cst_70 = arith.constant dense<0.000000e+00> : vector<8xf32>
    %161 = vector.multi_reduction <add>, %156, %cst_70 [1] : vector<8x32xf32> to vector<8xf32>
    %162 = vector.shape_cast %161 : vector<8xf32> to vector<8x1xf32>
    %cst_71 = arith.constant 3.200000e+01 : f32
    %163 = vector.broadcast %cst_71 : f32 to vector<8x1xf32>
    %164 = arith.divf %162, %163 : vector<8x1xf32>
    %165 = vector.broadcast %164 : vector<8x1xf32> to vector<8x32xf32>
    %166 = arith.subf %156, %165 : vector<8x32xf32>
    %167 = arith.mulf %166, %166 : vector<8x32xf32>
    %cst_72 = arith.constant dense<0.000000e+00> : vector<8xf32>
    %168 = vector.multi_reduction <add>, %167, %cst_72 [1] : vector<8x32xf32> to vector<8xf32>
    %169 = vector.shape_cast %168 : vector<8xf32> to vector<8x1xf32>
    %cst_73 = arith.constant 3.200000e+01 : f32
    %170 = vector.broadcast %cst_73 : f32 to vector<8x1xf32>
    %171 = arith.divf %169, %170 : vector<8x1xf32>
    %172 = vector.broadcast %164 : vector<8x1xf32> to vector<8x32xf32>
    %173 = arith.subf %156, %172 : vector<8x32xf32>
    %cst_74 = arith.constant 9.99999997E-7 : f32
    %174 = vector.broadcast %cst_74 : f32 to vector<8x1xf32>
    %175 = arith.addf %171, %174 : vector<8x1xf32>
    %176 = math.rsqrt %175 : vector<8x1xf32>
    %177 = vector.broadcast %176 : vector<8x1xf32> to vector<8x32xf32>
    %178 = arith.mulf %173, %177 : vector<8x32xf32>
    %179 = vector.broadcast %158 : vector<1x32xf32> to vector<8x32xf32>
    %180 = arith.mulf %178, %179 : vector<8x32xf32>
    %181 = vector.broadcast %160 : vector<1x32xf32> to vector<8x32xf32>
    %182 = arith.addf %180, %181 : vector<8x32xf32>
    %183 = arith.truncf %182 : vector<8x32xf32> to vector<8x32xbf16>
    %c0_75 = arith.constant 0 : index
    %c0_76 = arith.constant 0 : index
    %c0_77 = arith.constant 0 : index
    %184 = vector.load %arg17[%c0_75, %c0_76, %c0_77] : memref<1x32x128xbf16, #tpu.memory_space<vmem>>, vector<1x32x128xbf16>
    %185 = vector.shape_cast %184 : vector<1x32x128xbf16> to vector<32x128xbf16>
    %cst_78 = arith.constant dense<0.000000e+00> : vector<8x128xf32>
    %186 = tpu.matmul %183, %185, %cst_78 {dimension_numbers = #tpu.dot_dimension_numbers<[1], [0], [0], [1], [0, 0, 1, 1], [], []>} : vector<8x32xbf16>, vector<32x128xbf16>, vector<8x128xf32> -> vector<8x128xf32>
    %c0_79 = arith.constant 0 : index
    %c0_80 = arith.constant 0 : index
    %c0_81 = arith.constant 0 : index
    %187 = vector.load %arg18[%c0_79, %c0_80, %c0_81] : memref<1x1x128xf32, #tpu.memory_space<vmem>>, vector<1x1x128xf32>
    %188 = vector.shape_cast %187 : vector<1x1x128xf32> to vector<1x128xf32>
    %189 = vector.broadcast %188 : vector<1x128xf32> to vector<8x128xf32>
    %190 = arith.addf %186, %189 : vector<8x128xf32>
    %cst_82 = arith.constant 5.000000e-01 : f32
    %191 = vector.broadcast %cst_82 : f32 to vector<8x128xf32>
    %192 = arith.mulf %191, %190 : vector<8x128xf32>
    %cst_83 = arith.constant 0.707106769 : f32
    %193 = vector.broadcast %cst_83 : f32 to vector<8x128xf32>
    %194 = arith.mulf %190, %193 : vector<8x128xf32>
    %195 = math.erf %194 : vector<8x128xf32>
    %cst_84 = arith.constant 1.000000e+00 : f32
    %196 = vector.broadcast %cst_84 : f32 to vector<8x128xf32>
    %197 = arith.addf %196, %195 : vector<8x128xf32>
    %198 = arith.mulf %192, %197 : vector<8x128xf32>
    %199 = arith.truncf %198 : vector<8x128xf32> to vector<8x128xbf16>
    %c0_85 = arith.constant 0 : index
    %c0_86 = arith.constant 0 : index
    %c0_87 = arith.constant 0 : index
    %200 = vector.load %arg19[%c0_85, %c0_86, %c0_87] : memref<1x128x32xbf16, #tpu.memory_space<vmem>>, vector<1x128x32xbf16>
    %201 = vector.shape_cast %200 : vector<1x128x32xbf16> to vector<128x32xbf16>
    %cst_88 = arith.constant dense<0.000000e+00> : vector<8x32xf32>
    %202 = tpu.matmul %199, %201, %cst_88 {dimension_numbers = #tpu.dot_dimension_numbers<[1], [0], [0], [1], [0, 0, 1, 1], [], []>} : vector<8x128xbf16>, vector<128x32xbf16>, vector<8x32xf32> -> vector<8x32xf32>
    %c0_89 = arith.constant 0 : index
    %c0_90 = arith.constant 0 : index
    %c0_91 = arith.constant 0 : index
    %203 = vector.load %arg20[%c0_89, %c0_90, %c0_91] : memref<1x1x32xf32, #tpu.memory_space<vmem>>, vector<1x1x32xf32>
    %204 = vector.shape_cast %203 : vector<1x1x32xf32> to vector<1x32xf32>
    %205 = vector.broadcast %204 : vector<1x32xf32> to vector<8x32xf32>
    %206 = arith.addf %202, %205 : vector<8x32xf32>
    %207 = arith.addf %156, %206 : vector<8x32xf32>
    %c0_92 = arith.constant 0 : index
    %c0_93 = arith.constant 0 : index
    %208 = vector.load %arg24[%c0_92, %c0_93] : memref<8x32xf32, #tpu.memory_space<vmem>>, vector<8x32xf32>
    tpu.vector_store %arg24[%c0_92, %c0_93], %207 {strides = array<i32>} : memref<8x32xf32, #tpu.memory_space<vmem>>, vector<8x32xf32>,
    %c1_i32 = arith.constant 1 : i32
    %209 = arith.cmpi eq, %arg1, %c1_i32 : i32
    %210 = arith.extui %209 : i1 to i32
    %c0_i32_94 = arith.constant 0 : i32
    %211 = arith.cmpi ne, %210, %c0_i32_94 : i32
    scf.if %211 {
      %c0_95 = arith.constant 0 : index
      %c0_96 = arith.constant 0 : index
      %212 = vector.load %arg21[%c0_95, %c0_96] : memref<1x32xf32, #tpu.memory_space<vmem>>, vector<1x32xf32>
      %c0_97 = arith.constant 0 : index
      %c0_98 = arith.constant 0 : index
      %213 = vector.load %arg22[%c0_97, %c0_98] : memref<1x32xf32, #tpu.memory_space<vmem>>, vector<1x32xf32>
      %cst_99 = arith.constant dense<0.000000e+00> : vector<8xf32>
      %214 = vector.multi_reduction <add>, %207, %cst_99 [1] : vector<8x32xf32> to vector<8xf32>
      %215 = vector.shape_cast %214 : vector<8xf32> to vector<8x1xf32>
      %cst_100 = arith.constant 3.200000e+01 : f32
      %216 = vector.broadcast %cst_100 : f32 to vector<8x1xf32>
      %217 = arith.divf %215, %216 : vector<8x1xf32>
      %218 = vector.broadcast %217 : vector<8x1xf32> to vector<8x32xf32>
      %219 = arith.subf %207, %218 : vector<8x32xf32>
      %220 = arith.mulf %219, %219 : vector<8x32xf32>
      %cst_101 = arith.constant dense<0.000000e+00> : vector<8xf32>
      %221 = vector.multi_reduction <add>, %220, %cst_101 [1] : vector<8x32xf32> to vector<8xf32>
      %222 = vector.shape_cast %221 : vector<8xf32> to vector<8x1xf32>
      %cst_102 = arith.constant 3.200000e+01 : f32
      %223 = vector.broadcast %cst_102 : f32 to vector<8x1xf32>
      %224 = arith.divf %222, %223 : vector<8x1xf32>
      %225 = vector.broadcast %217 : vector<8x1xf32> to vector<8x32xf32>
      %226 = arith.subf %207, %225 : vector<8x32xf32>
      %cst_103 = arith.constant 9.99999997E-7 : f32
      %227 = vector.broadcast %cst_103 : f32 to vector<8x1xf32>
      %228 = arith.addf %224, %227 : vector<8x1xf32>
      %229 = math.rsqrt %228 : vector<8x1xf32>
      %230 = vector.broadcast %229 : vector<8x1xf32> to vector<8x32xf32>
      %231 = arith.mulf %226, %230 : vector<8x32xf32>
      %232 = vector.broadcast %212 : vector<1x32xf32> to vector<8x32xf32>
      %233 = arith.mulf %231, %232 : vector<8x32xf32>
      %234 = vector.broadcast %213 : vector<1x32xf32> to vector<8x32xf32>
      %235 = arith.addf %233, %234 : vector<8x32xf32>
      %cst_104 = arith.constant 0.000000e+00 : f32
      %236 = vector.broadcast %cst_104 : f32 to vector<8x96xf32>
      %237 = tpu.concatenate %235, %236 in 1 : vector<8x32xf32>, vector<8x96xf32> -> vector<8x128xf32>
      %c0_105 = arith.constant 0 : index
      %c0_106 = arith.constant 0 : index
      %c0_107 = arith.constant 0 : index
      %238 = vector.load %arg23[%c0_105, %c0_106, %c0_107] : memref<1x8x128xf32, #tpu.memory_space<vmem>>, vector<1x8x128xf32>
      %239 = vector.shape_cast %238 : vector<1x8x128xf32> to vector<8x128xf32>
      %240 = vector.shape_cast %237 : vector<8x128xf32> to vector<1x8x128xf32>
      tpu.vector_store %arg23[%c0_105, %c0_106, %c0_107], %240 {strides = array<i32>} : memref<1x8x128xf32, #tpu.memory_space<vmem>>, vector<1x8x128xf32>,
    } else {
    }
    return
  }
  func.func @transform_0(%arg0: i32, %arg1: i32) -> (i32, i32, i32) {
    %c0_i32 = arith.constant 0 : i32
    %c0_i32_0 = arith.constant 0 : i32
    %c0_i32_1 = arith.constant 0 : i32
    return %arg0, %c0_i32, %c0_i32_0 : i32, i32, i32
  }
  func.func @transform_1(%arg0: i32, %arg1: i32) -> (i32, i32, i32) {
    %c0_i32 = arith.constant 0 : i32
    %c0_i32_0 = arith.constant 0 : i32
    %c0_i32_1 = arith.constant 0 : i32
    return %arg0, %c0_i32, %c0_i32_0 : i32, i32, i32
  }
  func.func @transform_2(%arg0: i32, %arg1: i32) -> (i32, i32) {
    %c0_i32 = arith.constant 0 : i32
    %c0_i32_0 = arith.constant 0 : i32
    %c0_i32_1 = arith.constant 0 : i32
    return %c0_i32, %c0_i32_0 : i32, i32
  }
  func.func @transform_3(%arg0: i32, %arg1: i32) -> (i32, i32, i32) {
    %c0_i32 = arith.constant 0 : i32
    %c0_i32_0 = arith.constant 0 : i32
    %c0_i32_1 = arith.constant 0 : i32
    return %arg1, %c0_i32, %c0_i32_0 : i32, i32, i32
  }
  func.func @transform_4(%arg0: i32, %arg1: i32) -> (i32, i32, i32) {
    %c0_i32 = arith.constant 0 : i32
    %c0_i32_0 = arith.constant 0 : i32
    %c0_i32_1 = arith.constant 0 : i32
    return %arg1, %c0_i32, %c0_i32_0 : i32, i32, i32
  }
  func.func @transform_5(%arg0: i32, %arg1: i32) -> (i32, i32, i32) {
    %c0_i32 = arith.constant 0 : i32
    %c0_i32_0 = arith.constant 0 : i32
    %c0_i32_1 = arith.constant 0 : i32
    return %arg1, %c0_i32, %c0_i32_0 : i32, i32, i32
  }
  func.func @transform_6(%arg0: i32, %arg1: i32) -> (i32, i32, i32) {
    %c0_i32 = arith.constant 0 : i32
    %c0_i32_0 = arith.constant 0 : i32
    %c0_i32_1 = arith.constant 0 : i32
    return %arg1, %c0_i32, %c0_i32_0 : i32, i32, i32
  }
  func.func @transform_7(%arg0: i32, %arg1: i32) -> (i32, i32, i32) {
    %c0_i32 = arith.constant 0 : i32
    %c0_i32_0 = arith.constant 0 : i32
    %c0_i32_1 = arith.constant 0 : i32
    return %arg1, %c0_i32, %c0_i32_0 : i32, i32, i32
  }
  func.func @transform_8(%arg0: i32, %arg1: i32) -> (i32, i32, i32) {
    %c0_i32 = arith.constant 0 : i32
    %c0_i32_0 = arith.constant 0 : i32
    %c0_i32_1 = arith.constant 0 : i32
    return %arg1, %c0_i32, %c0_i32_0 : i32, i32, i32
  }
  func.func @transform_9(%arg0: i32, %arg1: i32) -> (i32, i32, i32) {
    %c0_i32 = arith.constant 0 : i32
    %c0_i32_0 = arith.constant 0 : i32
    %c0_i32_1 = arith.constant 0 : i32
    return %arg1, %c0_i32, %c0_i32_0 : i32, i32, i32
  }
  func.func @transform_10(%arg0: i32, %arg1: i32) -> (i32, i32, i32) {
    %c0_i32 = arith.constant 0 : i32
    %c0_i32_0 = arith.constant 0 : i32
    %c0_i32_1 = arith.constant 0 : i32
    return %arg1, %c0_i32, %c0_i32_0 : i32, i32, i32
  }
  func.func @transform_11(%arg0: i32, %arg1: i32) -> (i32, i32, i32) {
    %c0_i32 = arith.constant 0 : i32
    %c0_i32_0 = arith.constant 0 : i32
    %c0_i32_1 = arith.constant 0 : i32
    return %arg1, %c0_i32, %c0_i32_0 : i32, i32, i32
  }
  func.func @transform_12(%arg0: i32, %arg1: i32) -> (i32, i32, i32) {
    %c0_i32 = arith.constant 0 : i32
    %c0_i32_0 = arith.constant 0 : i32
    %c0_i32_1 = arith.constant 0 : i32
    return %arg1, %c0_i32, %c0_i32_0 : i32, i32, i32
  }
  func.func @transform_13(%arg0: i32, %arg1: i32) -> (i32, i32, i32) {
    %c0_i32 = arith.constant 0 : i32
    %c0_i32_0 = arith.constant 0 : i32
    %c0_i32_1 = arith.constant 0 : i32
    return %arg1, %c0_i32, %c0_i32_0 : i32, i32, i32
  }
  func.func @transform_14(%arg0: i32, %arg1: i32) -> (i32, i32, i32) {
    %c0_i32 = arith.constant 0 : i32
    %c0_i32_0 = arith.constant 0 : i32
    %c0_i32_1 = arith.constant 0 : i32
    return %arg1, %c0_i32, %c0_i32_0 : i32, i32, i32
  }
  func.func @transform_15(%arg0: i32, %arg1: i32) -> (i32, i32, i32) {
    %c0_i32 = arith.constant 0 : i32
    %c0_i32_0 = arith.constant 0 : i32
    %c0_i32_1 = arith.constant 0 : i32
    return %arg1, %c0_i32, %c0_i32_0 : i32, i32, i32
  }
  func.func @transform_16(%arg0: i32, %arg1: i32) -> (i32, i32, i32) {
    %c0_i32 = arith.constant 0 : i32
    %c0_i32_0 = arith.constant 0 : i32
    %c0_i32_1 = arith.constant 0 : i32
    return %arg1, %c0_i32, %c0_i32_0 : i32, i32, i32
  }
  func.func @transform_17(%arg0: i32, %arg1: i32) -> (i32, i32, i32) {
    %c0_i32 = arith.constant 0 : i32
    %c0_i32_0 = arith.constant 0 : i32
    %c0_i32_1 = arith.constant 0 : i32
    return %arg1, %c0_i32, %c0_i32_0 : i32, i32, i32
  }
  func.func @transform_18(%arg0: i32, %arg1: i32) -> (i32, i32, i32) {
    %c0_i32 = arith.constant 0 : i32
    %c0_i32_0 = arith.constant 0 : i32
    %c0_i32_1 = arith.constant 0 : i32
    return %arg1, %c0_i32, %c0_i32_0 : i32, i32, i32
  }
  func.func @transform_19(%arg0: i32, %arg1: i32) -> (i32, i32) {
    %c0_i32 = arith.constant 0 : i32
    %c0_i32_0 = arith.constant 0 : i32
    %c0_i32_1 = arith.constant 0 : i32
    return %c0_i32, %c0_i32_0 : i32, i32
  }
  func.func @transform_20(%arg0: i32, %arg1: i32) -> (i32, i32) {
    %c0_i32 = arith.constant 0 : i32
    %c0_i32_0 = arith.constant 0 : i32
    %c0_i32_1 = arith.constant 0 : i32
    return %c0_i32, %c0_i32_0 : i32, i32
  }
  func.func @transform_21(%arg0: i32, %arg1: i32) -> (i32, i32, i32) {
    %c0_i32 = arith.constant 0 : i32
    %c0_i32_0 = arith.constant 0 : i32
    %c0_i32_1 = arith.constant 0 : i32
    return %arg0, %c0_i32, %c0_i32_0 : i32, i32, i32
  }
}

</mosaic_0001>

<bundles_post_ra>
// kernel: prithvi_vit_forward.1
= control target key start
LH: loop header
LB: loop body
LE: loop exit
PB: predicated region body
PF: predicated region fallthrough
CT: control target
= control target key end

     0   :  { %s2899_s25 = smov 0   ;;  %s2901_s26 = smov 0   ;;  %s3284_s0 = inlined_call_operand.vmem [shape: f32[2,8,256], index: 0, kind: input, shape index: {}]   ;;  %s3285_s1 = inlined_call_operand.vmem [shape: f32[2,8,32], index: 1, kind: input, shape index: {}]   ;;  %s3286_s2 = inlined_call_operand.vmem [shape: bf16[256,32], index: 2, kind: input, shape index: {}]   ;;  %s3287_s3 = inlined_call_operand.vmem [shape: f32[2,1,32], index: 3, kind: input, shape index: {}]   ;;  %s3288_s4 = inlined_call_operand.vmem [shape: f32[2,1,32], index: 4, kind: input, shape index: {}]   ;;  %s3289_s5 = inlined_call_operand.vmem [shape: bf16[2,32,32], index: 5, kind: input, shape index: {}]   ;;  %s3290_s6 = inlined_call_operand.vmem [shape: bf16[2,32,32], index: 6, kind: input, shape index: {}]   ;;  %s3291_s7 = inlined_call_operand.vmem [shape: bf16[2,32,32], index: 7, kind: input, shape index: {}]   ;;  %s3292_s8 = inlined_call_operand.vmem [shape: f32[2,1,32], index: 8, kind: input, shape index: {}]   ;;  %s3293_s9 = inlined_call_operand.vmem [shape: f32[2,1,32], index: 9, kind: input, shape index: {}]   ;;  %s3294_s10 = inlined_call_operand.vmem [shape: f32[2,1,32], index: 10, kind: input, shape index: {}]   ;;  %s3295_s11 = inlined_call_operand.vmem [shape: bf16[2,32,32], index: 11, kind: input, shape index: {}]   ;;  %s3296_s12 = inlined_call_operand.vmem [shape: f32[2,1,32], index: 12, kind: input, shape index: {}]   ;;  %s3297_s13 = inlined_call_operand.vmem [shape: f32[2,1,32], index: 13, kind: input, shape index: {}]   ;;  %s3298_s14 = inlined_call_operand.vmem [shape: f32[2,1,32], index: 14, kind: input, shape index: {}]   ;;  %s3299_s15 = inlined_call_operand.vmem [shape: bf16[2,32,128], index: 15, kind: input, shape index: {}]   ;;  %s3300_s16 = inlined_call_operand.vmem [shape: f32[2,1,128], index: 16, kind: input, shape index: {}]   ;;  %s3301_s17 = inlined_call_operand.vmem [shape: bf16[2,128,32], index: 17, kind: input, shape index: {}]   ;;  %s3302_s18 = inlined_call_operand.vmem [shape: f32[2,1,32], index: 18, kind: input, shape index: {}]   ;;  %s3303_s19 = inlined_call_operand.vmem [shape: f32[1,32], index: 19, kind: input, shape index: {}]   ;;  %s3304_s20 = inlined_call_operand.vmem [shape: f32[1,32], index: 20, kind: input, shape index: {}]   ;;  %s3305_s21 = inlined_call_operand.vmem [shape: f32[2,8,128], index: 21, kind: output, shape index: {}]  }
   0x1   :  { %3312 = sst [smem:[#allocation11_spill]] %s3284_s0  ;;  %s2903_s27 = smov 0  }
   0x2   :  { %3313 = sst [smem:[#allocation12_spill]] %s3285_s1 }
   0x3   :  { %3314 = sst [smem:[#allocation13_spill]] %s3286_s2  ;;  %s2897_s2 = smov 0  }
   0x4   :  { %3315 = sst [smem:[#allocation14_spill]] %s3287_s3  ;;  %s2905_s3 = smov 0  }
   0x5   :  { %3316 = sst [smem:[#allocation15_spill]] %s3288_s4 }
   0x6   :  { %3317 = sst [smem:[#allocation16_spill]] %s3289_s5 }
   0x7   :  { %3318 = sst [smem:[#allocation17_spill]] %s3290_s6 }
   0x8   :  { %3319 = sst [smem:[#allocation18_spill]] %s3291_s7 }
   0x9   :  { %3320 = sst [smem:[#allocation19_spill]] %s3295_s11 }
   0xa   :  { %3321 = sst [smem:[#allocation20_spill]] %s3296_s12 }
   0xb   :  { %3322 = sst [smem:[#allocation21_spill]] %s3298_s14 }
   0xc   :  { %3323 = sst [smem:[#allocation22_spill]] %s3301_s17 }
   0xd   :  { %3324 = sst [smem:[#allocation23_spill]] %s3302_s18 }
   0xe   :  { %3325 = sst [smem:[#allocation24_spill]] %s3303_s19 }
   0xf   :  { %3326 = sst [smem:[#allocation25_spill]] %s3304_s20 }
  0x10   :  { %3327 = sst [smem:[#allocation26_spill]] %s3305_s21 }
  0x11 LB: > { %3328 = sst [smem:[#allocation3_spill]] %s2761_s2  ;;  %s40_s28 = sadd.s32 1, %s2769_s26  ;;  %s2777_s3 = sphi %s2905_s3, %s31_s3   ;;  %s2773_s27 = sphi %s2903_s27, %s3374_s27   ;;  %s2769_s26 = sphi %s2901_s26, %s3373_s26   ;;  %s2765_s25 = sphi %s2899_s25, %s3372_s25   ;;  %s2761_s2 = sphi %s2897_s2, %s3371_s2  }
  0x12   : > { %3329 = sst [smem:[#allocation4_spill]] %s2769_s26  ;;  %s43_s29 = sadd.s32 1, %s2773_s27 }
  0x13   : > { %3330 = sst [smem:[#allocation5_spill]] %s2773_s27  ;;  %p41_p0 = scmp.ge.s32.totalorder %s40_s28, 2 }
  0x14   : > { %3331 = sst [smem:[#allocation6_spill]] %s2777_s3  ;;  %p2376_p1 = scmp.ge.s32.totalorder %s2777_s3, 1 }
  0x15   : > { %p748_p2 = scmp.lt.s32.totalorder %s2777_s3, 5  ;;  %s3376_s28 = smov (%p41_p0, %s40_s28), 0 }
  0x16   : > { %3332 = sst [smem:[#allocation7_spill]] %s3376_s28  ;;  %s3378_s29 = smov (!%p41_p0, %s43_s29), %s2773_s27 }
  0x17   : > { %p749_p3 = pnand %p2376_p1, %p748_p2  ;;  %p45_p4 = scmp.ge.s32.totalorder %s3378_s29, 2 }
  0x19   : > { %s3380_s29 = smov (%p45_p4, %s3378_s29), 0  ;;  %752 = sbr.rel (%p749_p3) target bundleno = 3185 (0xc71), region = 104 }
  0x1a   : > { %3333 = sst [smem:[#allocation8_spill]] %s3380_s29 }
  0x20   : > { %p871_p5 = scmp.lt.s32.totalorder %s2765_s25, 1  ;;  %p880_p6 = scmp.lt.s32.totalorder %s2761_s2, 1 }
  0x21   : > { %s3334_s23 = sld [smem:[#allocation11_spill]]  ;;  %s3336_s28 = sld [smem:[#allocation12_spill]] }
  0x22   : > { %s3382_s25 = smov (!%p871_p5, %s2765_s25), 1  ;;  %s3340_s24 = sld [smem:[#allocation16_spill]] }
  0x23   : > { %s2931_s0 = scalar_select %p880_p6, %s2761_s2, 1 }
  0x24   : > { %s2456_s4 = sshll.u32 %s3382_s25, 4  ;;  %s2379_s30 = sshll.u32 %s3382_s25, 3 }
  0x25   : > { %s2457_s17 = sshll.u32 %s2931_s0, 4  ;;  %s3341_s6 = sld [smem:[#allocation17_spill]] }
  0x26   : > { %s3342_s7 = sld [smem:[#allocation18_spill]]  ;;  %s3343_s11 = sld [smem:[#allocation19_spill]] }
  0x27   : > { %s2936_s1 = scalar_lea.vmem %s3334_s23, %s2456_s4  ;;  %s2941_s27 = scalar_lea.vmem %s3336_s28, %s2379_s30 }
  0x28   : > { %3335 = sst [smem:[#allocation9_spill]] %s2936_s1  ;;  %s2959_s28 = scalar_lea.vmem %s3340_s24, %s2457_s17 }
  0x29   : > { %3337 = sst [smem:[#allocation10_spill]] %s2941_s27  ;;  %s2999_s4 = scalar_lea.vmem %s3299_s15, %s2457_s17 }
  0x2a   : > { %s3346_s19 = sld [smem:[#allocation22_spill]]  ;;  %s3348_s14 = sld [smem:[#allocation26_spill]] }
  0x2b   : > { %s2964_s26 = scalar_lea.vmem %s3341_s6, %s2457_s17  ;;  %s3347_s6 = sld [smem:[#allocation23_spill]] }
  0x2c   : > { %s2969_s18 = scalar_lea.vmem %s3342_s7, %s2457_s17  ;;  %s2982_s25 = scalar_lea.vmem %s3343_s11, %s2457_s17 }
  0x2d   : > { %s2462_s11 = sshll.u32 %s2931_s0, 6  ;;  %s3349_s17 = sld [smem:[#allocation3_spill]] }
  0x30   : > { %s3009_s12 = scalar_lea.vmem %s3346_s19, %s2462_s11  ;;  %s3018_s5 = scalar_lea.vmem %s3348_s14, %s2379_s30 }
  0x31   : > { %s939_s7 = scalar_lea.vmem %s3347_s6, %s2931_s0 }
  0x33   : > { %p2393_p7 = scmp.ne.s32.totalorder %s3349_s17, 0 }
  0x34   : > { %s3350_s24 = sld [smem:[#allocation13_spill]] (!%p2393_p7)  ;;  %s3351_s30 = sld [smem:[#allocation9_spill]] (!%p2393_p7)  ;;  %vm1122_vm0 = vcmask (!%p2393_p7), 261120  }
  0x35   : > { %948 = sbr.rel (%p2393_p7) target bundleno = 309 (0x135), region = 108  ;;  %s3352_s20 = sld [smem:[#allocation10_spill]] (!%p2393_p7) }
  0x3a   : > { %v2681_v0 = vld [vmem:[%s3350_s24 + $0x40] sm:$0xff] (!%p2393_p7)   ;;  %v2683_v2 = vld [vmem:[%s3350_s24 + $0x48] sm:$0xff] (!%p2393_p7)   ;;  %v2685_v4 = vld [vmem:[%s3350_s24 + $0x50] sm:$0xff] (!%p2393_p7)  }
  0x3b   : > { %v2682_v1 = vld [vmem:[%s3350_s24] sm:$0xff] (!%p2393_p7)   ;;  %2463 = vmatprep.subr.bf16.mxu0 (!%p2393_p7), %v2681_v0  ;;  %v2684_v3 = vld [vmem:[%s3350_s24 + $0x8] sm:$0xff] (!%p2393_p7)   ;;  %v2686_v5 = vld [vmem:[%s3350_s24 + $0x10] sm:$0xff] (!%p2393_p7)  }
  0x3c   : > { %2464 = vmatpush3.bf16.msra.mxu0 %v2682_v1  ;;  %v2687_v6 = vld [vmem:[%s3350_s24 + $0x58] sm:$0xff]   ;;  %v2689_v8 = vld [vmem:[%s3350_s24 + $0x60] sm:$0xff]   ;;  %v2691_v10 = vld [vmem:[%s3350_s24 + $0x68] sm:$0xff]  }
  0x3d   : > { %2465 = vmatprep.subr.bf16.mxu0 %v2683_v2  ;;  %v2688_v7 = vld [vmem:[%s3350_s24 + $0x18] sm:$0xff]   ;;  %v2690_v9 = vld [vmem:[%s3350_s24 + $0x20] sm:$0xff]   ;;  %v950_v11 = vld [vmem:[%s3351_s30 + $0x8] sm:$0xff] }
  0x3e   : > { %v952_v12 = vpack.c.bf16 %v950_v11, %v950_v11  ;;  %v2692_v13 = vld [vmem:[%s3350_s24 + $0x28] sm:$0xff]   ;;  %v2693_v14 = vld [vmem:[%s3350_s24 + $0x70] sm:$0xff]   ;;  %v2695_v16 = vld [vmem:[%s3350_s24 + $0x78] sm:$0xff]  }
  0x3f   : > { %v2694_v15 = vld [vmem:[%s3350_s24 + $0x30] sm:$0xff]   ;;  %v2696_v17 = vld [vmem:[%s3350_s24 + $0x38] sm:$0xff]   ;;  %v949_v18 = vld [vmem:[%s3351_s30] sm:$0xff] }
  0x40   : > { %2466 = vmatpush3.bf16.msra.mxu0 %v2684_v3  ;;  %1114 = vmatprep.mubr.bf16.mxu0 %v952_v12  ;;  %v951_v19 = vpack.c.bf16 %v949_v18, %v949_v18  ;;  %v985_v21 = vld [vmem:[%s3352_s20] sm:$0xff] }
  0x41   : > { %2467 = vmatprep.subr.bf16.mxu0 %v2685_v4 }
  0x44   : > { %2468 = vmatpush3.bf16.msra.mxu0 %v2686_v5 }
  0x45   : > { %2469 = vmatprep.subr.bf16.mxu0 %v2687_v6 }
  0x48   : > { %2470 = vmatpush3.bf16.msra.mxu0 %v2688_v7 }
  0x49   : > { %2471 = vmatprep.subr.bf16.mxu0 %v2689_v8 }
  0x4c   : > { %2472 = vmatpush3.bf16.msra.mxu0 %v2690_v9 }
  0x4d   : > { %2473 = vmatprep.subr.bf16.mxu0 %v2691_v10 }
  0x50   : > { %2474 = vmatpush3.bf16.msra.mxu0 %v2692_v13 }
  0x51   : > { %2475 = vmatprep.subr.bf16.mxu0 %v2693_v14 }
  0x54   : > { %2476 = vmatpush3.bf16.msra.mxu0 %v2694_v15 }
  0x55   : > { %2477 = vmatprep.subr.bf16.mxu0 %v2695_v16 }
  0x58   : > { %2478 = vmatpush3.bf16.msra.mxu0 %v2696_v17 }
  0x5b   : > { %1115 = vmatmul.mubr.bf16.vlgmr.msra.gmra.mrb[0].mxu0 %v951_v19 }
 0x12e   : > { %v2479_v20 = vpop.f32.mrb[0].mxu0 }
 0x12f   : > { %v2480_v22 = vpop.f32.mrb[1].mxu0 }
 0x130   : > { %v2481_v23 = vadd.f32 %v2480_v22, %v2479_v20  ;;  %v2482_v24 = vpop.f32.mrb[2].mxu0 }
 0x131   : > { %v2483_v25 = vpop.f32.mrb[3].mxu0 }
 0x132   : > { %v1117_v26 = vadd.f32 %v2481_v23, %v985_v21 }
 0x134   : > { %1123 = vst.msk [vmem:[#allocation2] sm:$0xff] %vm1122_vm0, %v1117_v26 }
 0x135 PF: > { %vm1127_vm1 = vcmask 261120   ;;  %v2697_v34 = vld [vmem:[%s2959_s28] sm:$0xff]   ;;  %v2779_v35 = vmov 0.0   ;;  %vm2780_vm2 = vmmov 0   ;;  %v2698_v36 = vld [vmem:[%s2959_s28 + $0x8] sm:$0xff]   ;;  %s3353_s19 = sld [smem:[#allocation14_spill]]  ;;  %s3358_s17 = scalar_lea.vmem %s3293_s9, %s2931_s0  ;;  %v1349_v20 = vlaneseq }
 0x136   : > { %2525 = vmatprep.subr.bf16.mxu0 %v2779_v35  ;;  %2529 = vmatprep.mubr.msk.bf16.mxu0 %vm2780_vm2, %v2779_v35  ;;  %s3355_s1 = sld [smem:[#allocation15_spill]]  ;;  %v2699_v46 = vld [vmem:[%s2964_s26] sm:$0xff]   ;;  %v2700_v48 = vld [vmem:[%s2964_s26 + $0x8] sm:$0xff]   ;;  %vm1356_vm3 = vcmask 64512   ;;  %s2781_s22 = smov 112   ;;  %vm1419_vm4 = vcmask 1043456  }
 0x137   : > { %2526 = vmatpush3.bf16.msra.mxu0 %v2697_v34  ;;  %2549 = vmatprep.subr.bf16.mxu1 %v2779_v35  ;;  %v2701_v49 = vld [vmem:[%s2969_s18] sm:$0xff]   ;;  %v2702_v50 = vld [vmem:[%s2969_s18 + $0x8] sm:$0xff]   ;;  %s3357_s18 = scalar_lea.vmem %s3292_s8, %s2931_s0  ;;  %s2782_s29 = smov 120   ;;  %v1350_v21 = vand.u32 127, %v1349_v20  ;;  %vm1812_vm6 = vcmask 130048   ;;  %vm1814_vm7 = vcmask 195584  }
 0x138   : > { %2527 = vmatprep.subr.bf16.mxu0 %v2779_v35  ;;  %2551 = vmatprep.mubr.msk.bf16.mxu1 %vm2780_vm2, %v2779_v35  ;;  %v2412_v55 = vld [vmem:[%s3357_s18] ss:$0 sm:$0xff]  ;;  %s3359_s30 = scalar_lea.vmem %s3294_s10, %s2931_s0  ;;  %s2783_s28 = smov 104  }
 0x139   : > { %v2416_v56 = vld [vmem:[%s3358_s17] ss:$0 sm:$0xff]  ;;  %vm1351_vm5 = vcmp.lt.s32.totalorder %v1350_v21, 3  ;;  %s2786_s14 = smov 24   ;;  %s3362_s23 = scalar_lea.vmem %s3297_s13, %s2931_s0 }
 0x13a   : > { %v2420_v2 = vld [vmem:[%s3359_s30] ss:$0 sm:$0xff]  ;;  %s3363_s21 = sld [smem:[#allocation21_spill]]  ;;  %s3365_s27 = scalar_lea.vmem %s3300_s16, %s2931_s0 }
 0x13b   : > { %v3072_v27 = vld [vmem:[#allocation2] sm:$0xff]  ;;  %2528 = vmatpush3.bf16.msra.mxu0 %v2698_v36  ;;  %s3354_s6 = scalar_lea.vmem %s3353_s19, %s2931_s0  ;;  %s2784_s19 = smov 8  }
 0x13c   : > { %v1128_v28 = vsel %vm1127_vm1, %v3072_v27, 0.0  ;;  %2533 = vmatprep.subr.bf16.mxu0 %v2779_v35  ;;  %v2410_v41 = vld [vmem:[%s3354_s6] ss:$0 sm:$0xff]  ;;  %s3356_s20 = scalar_lea.vmem %s3355_s1, %s2931_s0  ;;  %s2785_s6 = smov 16  }
 0x13d   : > { %1129 = vadd.xlane.f32.xlu0 %v1128_v28  ;;  %v2411_v43 = vld [vmem:[%s3356_s20] ss:$0 sm:$0xff]  ;;  %s3360_s1 = sld [smem:[#allocation20_spill]] }
 0x140   : > { %s3364_s17 = scalar_lea.vmem %s3363_s21, %s2931_s0 }
 0x143   : > { %s3361_s20 = scalar_lea.vmem %s3360_s1, %s2931_s0 }
 0x1ca   : > { %v1130_v29 = vpop.xlane.xlu0 %1129 }
 0x1cb   : > { %v1132_v30 = vmul.f32 0.03125, %v1130_v29 }
 0x1cd   : > { %v1133_v31 = vsub.f32 %v3072_v27, %v1132_v30 }
 0x1cf   : > { %v1134_v32 = vmul.f32 %v1133_v31, %v1133_v31 }
 0x1d1   : > { %v1135_v33 = vsel %vm1127_vm1, %v1134_v32, 0.0 }
 0x1d2   : > { %1136 = vadd.xlane.f32.xlu0 %v1135_v33 }
 0x25f   : > { %v1137_v37 = vpop.xlane.xlu0 %1136 }
 0x260   : > { %v1138_v38 = vmul.f32 0.03125, %v1137_v37 }
 0x262   : > { %v1139_v39 = vadd.f32 1e-06, %v1138_v38 }
 0x264   : > { %2715 = vrsqrt.f32 %v1139_v39 }
 0x26e   : > { %v2716_v40 = vpop.eup %2715 }
 0x26f   : > { %v1141_v42 = vmul.f32 %v2716_v40, %v1133_v31 }
 0x271   : > { %v1148_v44 = vmul.f32 %v2410_v41, %v1141_v42 }
 0x273   : > { %v1155_v45 = vadd.f32 %v2411_v43, %v1148_v44 }
 0x275   : > { %v1156_v47 = vpack.c.bf16 %v1155_v45, %v1155_v45 }
 0x277   : > { %2530 = vmatmul.mubr.msk.bf16.vlgmr.msra.gmra.mrb[0].mxu0 %vm1127_vm1, %v1156_v47 }
 0x278   : > { %2534 = vmatpush3.bf16.msra.mxu0 %v2699_v46  ;;  %2537 = vmatprep.mubr.msk.bf16.mxu0 %vm2780_vm2, %v2779_v35 }
 0x279   : > { %2535 = vmatprep.subr.bf16.mxu0 %v2779_v35 }
 0x27c   : > { %2536 = vmatpush3.bf16.msra.mxu0 %v2700_v48 }
 0x27d   : > { %2541 = vmatprep.subr.bf16.mxu0 %v2779_v35 }
 0x27f   : > { %2538 = vmatmul.mubr.msk.bf16.vlgmr.msra.gmra.mrb[4].mxu0 %vm1127_vm1, %v1156_v47 }
 0x280   : > { %2542 = vmatpush3.bf16.msra.mxu0 %v2701_v49  ;;  %2545 = vmatprep.mubr.msk.bf16.mxu0 %vm2780_vm2, %v2779_v35 }
 0x281   : > { %2543 = vmatprep.subr.bf16.mxu0 %v2779_v35 }
 0x284   : > { %2544 = vmatpush3.bf16.msra.mxu0 %v2702_v50 }
 0x285   : > { %2555 = vmatprep.subr.bf16.mxu0 %v2779_v35 }
 0x287   : > { %2546 = vmatmul.mubr.msk.bf16.vlgmr.msra.gmra.mrb[8].mxu0 %vm1127_vm1, %v1156_v47 }
 0x288   : > { %2557 = vmatprep.mubr.msk.bf16.mxu0 %vm2780_vm2, %v2779_v35 }
 0x34a   : > { %v1217_v51 = vpop.f32.mrb[0].mxu0 }
 0x34b   : > { %v2531_v52 = vpop.f32.mrb[1].mxu0  ;;  %v1218_v57 = vadd.f32 %v2412_v55, %v1217_v51 }
 0x34c   : > { %v1220_v53 = vpop.f32.mrb[2].mxu0 }
 0x34d   : > { %v2532_v54 = vpop.f32.mrb[3].mxu0  ;;  %v1352_v62 = vmul.f32 0.35355338, %v1218_v57 }
 0x34f   : > { %v1353_v3 = vpack.c.bf16 %v1352_v62, %v1352_v62 }
 0x352   : > { %v1280_v58 = vpop.f32.mrb[4].mxu0 }
 0x353   : > { %v1281_v59 = vadd.f32 %v2416_v56, %v1280_v58  ;;  %v2539_v60 = vpop.f32.mrb[5].mxu0 }
 0x354   : > { %v1283_v61 = vpop.f32.mrb[6].mxu0 }
 0x355   : > { %v1354_v63 = vpack.c.bf16 %v1281_v59, %v1281_v59  ;;  %v2540_v0 = vpop.f32.mrb[7].mxu0 }
 0x357   : > { %1579 = vrot.lane.b32.xlu0 %v1354_v63, %s2781_s22  ;;  %1467 = vrot.lane.b32.xlu1 %v1354_v63, %s2782_s29  ;;  %v1361_v1 = vsel %vm1356_vm3, %v1354_v63, 0 }
 0x358   : > { %2550 = vmatpush3.bf16.xpose.msra.mxu1 %v1361_v1 }
 0x359   : > { %2561 = vmatprep.subr.bf16.mxu1 %v2779_v35 }
 0x35a   : > { %v1343_v4 = vpop.f32.mrb[8].mxu0 }
 0x35b   : > { %v1344_v5 = vadd.f32 %v2420_v2, %v1343_v4  ;;  %1464 = vrot.lane.b32.xlu1 %v1353_v3, %s2782_s29  ;;  %v2547_v6 = vpop.f32.mrb[9].mxu0 }
 0x35c   : > { %v1346_v7 = vpop.f32.mrb[10].mxu0 }
 0x35d   : > { %v3135_v8 = vpack.c.bf16 %v1344_v5, %v1344_v5  ;;  %v2548_v9 = vpop.f32.mrb[11].mxu0 }
 0x35f   : > { %1577 = vrot.lane.b32.xlu1 %v1353_v3, %s2781_s22  ;;  %2552 = vmatmul.mubr.msk.bf16.vlgmr.msra.gmra.mrb[0].mxu1 %vm1356_vm3, %v1353_v3  ;;  %v1421_v10 = vsel %vm1419_vm4, %v3135_v8, 0 }
 0x360   : > { %2556 = vmatpush3.bf16.msra.mxu0 %v1421_v10  ;;  %2563 = vmatprep.mubr.msk.bf16.mxu1 %vm2780_vm2, %v2779_v35 }
 0x361   : > { %2567 = vmatprep.subr.bf16.mxu0 %v2779_v35 }
 0x363   : > { %1690 = vrot.lane.b32.xlu1 %v1354_v63, %s2783_s28 }
 0x367   : > { %1688 = vrot.lane.b32.xlu1 %v1353_v3, %s2783_s28 }
 0x3c9   : > { %v1468_v11 = vpop.permute.xlu1 %1467  ;;  %v1580_v14 = vpop.permute.xlu0 %1579 }
 0x3ca   : > { %v1473_v12 = vsel %vm1356_vm3, %v1468_v11, 0  ;;  %v1585_v16 = vsel %vm1356_vm3, %v1580_v14, 0 }
 0x3cb   : > { %2562 = vmatpush3.bf16.xpose.msra.mxu1 %v1473_v12 }
 0x3cc   : > { %2573 = vmatprep.subr.bf16.mxu1 %v2779_v35 }
 0x3cd   : > { %v1465_v13 = vpop.permute.xlu1 %1464 }
 0x3d1   : > { %v1578_v15 = vpop.permute.xlu1 %1577 }
 0x3d2   : > { %2564 = vmatmul.mubr.msk.bf16.vlgmr.msra.gmra.mrb[4].mxu1 %vm1356_vm3, %v1465_v13 }
 0x3d3   : > { %2574 = vmatpush3.bf16.xpose.msra.mxu1 %v1585_v16  ;;  %2575 = vmatprep.mubr.msk.bf16.mxu1 %vm2780_vm2, %v2779_v35 }
 0x3d4   : > { %2585 = vmatprep.subr.bf16.mxu1 %v2779_v35 }
 0x3d5   : > { %v1691_v17 = vpop.permute.xlu1 %1690 }
 0x3d6   : > { %v1696_v18 = vsel %vm1356_vm3, %v1691_v17, 0 }
 0x3d9   : > { %v1689_v19 = vpop.permute.xlu1 %1688 }
 0x3da   : > { %2576 = vmatmul.mubr.msk.bf16.vlgmr.msra.gmra.mrb[8].mxu1 %vm1356_vm3, %v1578_v15 }
 0x3db   : > { %2586 = vmatpush3.bf16.xpose.msra.mxu1 %v1696_v18  ;;  %2587 = vmatprep.mubr.msk.bf16.mxu1 %vm2780_vm2, %v2779_v35 }
 0x3dc   : > { %2597 = vmatprep.subr.bf16.mxu1 %v2779_v35 }
 0x3e2   : > { %2588 = vmatmul.mubr.msk.bf16.vlgmr.msra.gmra.mrb[12].mxu1 %vm1356_vm3, %v1689_v19 }
 0x3e3   : > { %2601 = vmatprep.mubr.msk.bf16.mxu1 %vm2780_vm2, %v2779_v35 }
 0x432   : > { %v1397_v22 = vpop.f32.mrb[0].mxu1 }
 0x433   : > { %v1403_v23 = vsel %vm1351_vm5, %v1397_v22, -1e+30  ;;  %v2553_v24 = vpop.f32.mrb[1].mxu1 }
 0x434   : > { %v1400_v25 = vpop.f32.mrb[2].mxu1  ;;  %v1404_v26 = vsel %vm1356_vm3, %v1403_v23, -inf }
 0x435   : > { %1405 = vmax.xlane.f32.xlu1 %v1404_v26  ;;  %v2554_v28 = vpop.f32.mrb[3].mxu1 }
 0x4a5   : > { %v1509_v29 = vpop.f32.mrb[4].mxu1 }
 0x4a6   : > { %v1515_v30 = vsel %vm1351_vm5, %v1509_v29, -1e+30  ;;  %v2565_v31 = vpop.f32.mrb[5].mxu1 }
 0x4a7   : > { %v1512_v32 = vpop.f32.mrb[6].mxu1  ;;  %v1516_v33 = vsel %vm1356_vm3, %v1515_v30, -inf  ;;  %v2703_v31 = vld [vmem:[%s2982_s25] sm:$0xff]  }
 0x4a8   : > { %1517 = vmax.xlane.f32.xlu0 %v1516_v33  ;;  %v2566_v34 = vpop.f32.mrb[7].mxu1  ;;  %2598 = vmatpush3.bf16.msra.mxu1 %v2703_v31 }
 0x4a9   : > { %2599 = vmatprep.subr.bf16.mxu1 %v2779_v35 }
 0x4ad   : > { %v1621_v36 = vpop.f32.mrb[8].mxu1 }
 0x4ae   : > { %v1627_v37 = vsel %vm1351_vm5, %v1621_v36, -1e+30  ;;  %v2577_v38 = vpop.f32.mrb[9].mxu1 }
 0x4af   : > { %v1624_v39 = vpop.f32.mrb[10].mxu1  ;;  %v1628_v40 = vsel %vm1356_vm3, %v1627_v37, -inf }
 0x4b0   : > { %1629 = vmax.xlane.f32.xlu1 %v1628_v40  ;;  %v2578_v41 = vpop.f32.mrb[11].mxu1 }
 0x4b1   : > { %v2704_v41 = vld [vmem:[%s2982_s25 + $0x8] sm:$0xff]  }
 0x4b2   : > { %2600 = vmatpush3.bf16.msra.mxu1 %v2704_v41 }
 0x4b3   : > { %2613 = vmatprep.subr.bf16.mxu1 %v2779_v35 }
 0x4b5   : > { %v1732_v42 = vpop.f32.mrb[12].mxu1 }
 0x4b6   : > { %v1738_v43 = vsel %vm1351_vm5, %v1732_v42, -1e+30  ;;  %v2589_v44 = vpop.f32.mrb[13].mxu1 }
 0x4b7   : > { %v1735_v45 = vpop.f32.mrb[14].mxu1  ;;  %v1739_v46 = vsel %vm1356_vm3, %v1738_v43, -inf }
 0x4b8   : > { %1740 = vmax.xlane.f32.xlu1 %v1739_v46  ;;  %v2590_v47 = vpop.f32.mrb[15].mxu1 }
 0x4c2   : > { %v1406_v48 = vpop.xlane.xlu1 %1405 }
 0x4c3   : > { %v1407_v49 = vsub.f32 %v1403_v23, %v1406_v48 }
 0x4c5   : > { %v1408_v50 = vmul.f32 1.442695, %v1407_v49 }
 0x4c7   : > { %2717 = vpow2.f32 %v1408_v50 }
 0x4d1   : > { %v2718_v51 = vpop.eup %2717 }
 0x4d2   : > { %v1410_v52 = vsel %vm1356_vm3, %v2718_v51, 0.0 }
 0x4d3   : > { %1411 = vadd.xlane.f32.xlu0 %v1410_v52 }
 0x535   : > { %v1518_v53 = vpop.xlane.xlu0 %1517 }
 0x536   : > { %v1519_v54 = vsub.f32 %v1515_v30, %v1518_v53  ;;  %v2432_v53 = vld [vmem:[%s3361_s20] ss:$0 sm:$0xff] }
 0x538   : > { %v1520_v55 = vmul.f32 1.442695, %v1519_v54 }
 0x53a   : > { %2719 = vpow2.f32 %v1520_v55 }
 0x53d   : > { %v1630_v56 = vpop.xlane.xlu1 %1629 }
 0x53e   : > { %v1631_v57 = vsub.f32 %v1627_v37, %v1630_v56 }
 0x540   : > { %v1632_v58 = vmul.f32 1.442695, %v1631_v57 }
 0x542   : > { %2721 = vpow2.f32 %v1632_v58 }
 0x544   : > { %v2720_v59 = vpop.eup %2719 }
 0x545   : > { %v1522_v60 = vsel %vm1356_vm3, %v2720_v59, 0.0  ;;  %v1741_v0 = vpop.xlane.xlu1 %1740 }
 0x546   : > { %1523 = vadd.xlane.f32.xlu1 %v1522_v60  ;;  %v1742_v1 = vsub.f32 %v1738_v43, %v1741_v0 }
 0x548   : > { %v1743_v2 = vmul.f32 1.442695, %v1742_v1 }
 0x54c   : > { %v2722_v61 = vpop.eup %2721 }
 0x54d   : > { %v1634_v62 = vsel %vm1356_vm3, %v2722_v61, 0.0 }
 0x54e   : > { %1635 = vadd.xlane.f32.xlu0 %v1634_v62 }
 0x557   : > { %1640 = vrot.lane.b32.xlu1 %v3135_v8, %s2781_s22 }
 0x560   : > { %v1412_v63 = vpop.xlane.xlu0 %1411 }
 0x561   : > { %2723 = vrcp.f32 %v1412_v63 }
 0x562   : > { %2725 = vpow2.f32 %v1743_v2  ;;  %v2705_v2 = vld [vmem:[%s2999_s4] sm:$0xff]  }
 0x564   : > { %1529 = vrot.lane.b32.xlu0 %v3135_v8, %s2782_s29 }
 0x56b   : > { %v2724_v3 = vpop.eup %2723 }
 0x56c   : > { %v1414_v4 = vmul.f32 %v2724_v3, %v2718_v51  ;;  %v2726_v6 = vpop.eup %2725  ;;  %v2707_v3 = vld [vmem:[%s3009_s12] sm:$0xff]  }
 0x56d   : > { %v1745_v7 = vsel %vm1356_vm3, %v2726_v6, 0.0 }
 0x56e   : > { %v1415_v5 = vpack.c.bf16 %v1414_v4, %v1414_v4  ;;  %v2708_v4 = vld [vmem:[%s3009_s12 + $0x8] sm:$0xff]  }
 0x570   : > { %2558 = vmatmul.mubr.msk.bf16.vlgmr.msra.gmra.mrb[12].mxu0 %vm1356_vm3, %v1415_v5  ;;  %v2709_v5 = vld [vmem:[%s3009_s12 + $0x10] sm:$0xff]  }
 0x571   : > { %2569 = vmatprep.mubr.msk.bf16.mxu0 %vm2780_vm2, %v2779_v35 }
 0x57b   : > { %1746 = vadd.xlane.f32.xlu1 %v1745_v7 }
 0x58c   : > { %1751 = vrot.lane.b32.xlu1 %v3135_v8, %s2783_s28  ;;  %s3367_s28 = sld [smem:[#allocation3_spill]] }
 0x592   : > { %p2451_p8 = scmp.ne.s32.totalorder %s3367_s28, 1 }
 0x593   : > { %s3369_s25 = sld [smem:[#allocation25_spill]] (!%p2451_p8) }
 0x5d3   : > { %v1524_v9 = vpop.xlane.xlu1 %1523 }
 0x5d4   : > { %2727 = vrcp.f32 %v1524_v9 }
 0x5d7   : > { %v1641_v15 = vpop.permute.xlu1 %1640 }
 0x5d8   : > { %v1646_v17 = vsel %vm1419_vm4, %v1641_v15, 0 }
 0x5db   : > { %v1636_v10 = vpop.xlane.xlu0 %1635 }
 0x5dc   : > { %2729 = vrcp.f32 %v1636_v10 }
 0x5de   : > { %v2728_v11 = vpop.eup %2727 }
 0x5df   : > { %v1526_v12 = vmul.f32 %v2728_v11, %v2720_v59  ;;  %v1530_v13 = vpop.permute.xlu0 %1529  ;;  %v2436_v11 = vld [vmem:[%s3362_s23] ss:$0 sm:$0xff] }
 0x5e0   : > { %v1535_v14 = vsel %vm1419_vm4, %v1530_v13, 0  ;;  %v2437_v13 = vld [vmem:[%s3364_s17] ss:$0 sm:$0xff] }
 0x5e1   : > { %2568 = vmatpush3.bf16.msra.mxu0 %v1535_v14  ;;  %v1527_v16 = vpack.c.bf16 %v1526_v12, %v1526_v12 }
 0x5e2   : > { %2579 = vmatprep.subr.bf16.mxu0 %v2779_v35 }
 0x5e4   : > { %2570 = vmatmul.mubr.msk.bf16.vlgmr.msra.gmra.mrb[16].mxu0 %vm1356_vm3, %v1527_v16 }
 0x5e5   : > { %2580 = vmatpush3.bf16.msra.mxu0 %v1646_v17  ;;  %2581 = vmatprep.mubr.msk.bf16.mxu0 %vm2780_vm2, %v2779_v35  ;;  %v2710_v17 = vld [vmem:[%s3009_s12 + $0x18] sm:$0xff]  }
 0x5e6   : > { %v2730_v8 = vpop.eup %2729  ;;  %2591 = vmatprep.subr.bf16.mxu0 %v2779_v35 }
 0x5e7   : > { %v1638_v18 = vmul.f32 %v2730_v8, %v2722_v61  ;;  %v2711_v8 = vld [vmem:[%s3009_s12 + $0x20] sm:$0xff]  }
 0x5e9   : > { %v1639_v19 = vpack.c.bf16 %v1638_v18, %v1638_v18  ;;  %v2712_v18 = vld [vmem:[%s3009_s12 + $0x28] sm:$0xff]  }
 0x5ec   : > { %2582 = vmatmul.mubr.msk.bf16.vlgmr.msra.gmra.mrb[20].mxu0 %vm1356_vm3, %v1639_v19  ;;  %v2713_v19 = vld [vmem:[%s3009_s12 + $0x30] sm:$0xff]  }
 0x5ed   : > { %2593 = vmatprep.mubr.msk.bf16.mxu0 %vm2780_vm2, %v2779_v35 }
 0x608   : > { %v1747_v20 = vpop.xlane.xlu1 %1746 }
 0x609   : > { %2731 = vrcp.f32 %v1747_v20  ;;  %v2714_v20 = vld [vmem:[%s3009_s12 + $0x38] sm:$0xff]  }
 0x60c   : > { %v1752_v21 = vpop.permute.xlu1 %1751 }
 0x60d   : > { %v1757_v22 = vsel %vm1419_vm4, %v1752_v21, 0  ;;  %v2438_v21 = vld [vmem:[%s3365_s27] ss:$0 sm:$0xff] }
 0x60e   : > { %2592 = vmatpush3.bf16.msra.mxu0 %v1757_v22 }
 0x60f   : > { %2605 = vmatprep.subr.bf16.mxu0 %v2779_v35 }
 0x613   : > { %v2732_v23 = vpop.eup %2731 }
 0x614   : > { %v1749_v24 = vmul.f32 %v2732_v23, %v2726_v6 }
 0x616   : > { %v1750_v25 = vpack.c.bf16 %v1749_v24, %v1749_v24 }
 0x618   : > { %2594 = vmatmul.mubr.msk.bf16.vlgmr.msra.gmra.mrb[24].mxu0 %vm1356_vm3, %v1750_v25 }
 0x619   : > { %2609 = vmatprep.mubr.msk.bf16.mxu0 %vm2780_vm2, %v2779_v35  ;;  %2606 = vmatpush3.bf16.msra.mxu0 %v2705_v2 }
 0x61a   : > { %2607 = vmatprep.subr.bf16.mxu0 %v2779_v35 }
 0x643   : > { %v1457_v26 = vpop.f32.mrb[12].mxu0 }
 0x644   : > { %v2559_v28 = vpop.f32.mrb[13].mxu0 }
 0x645   : > { %v1460_v29 = vpop.f32.mrb[14].mxu0 }
 0x646   : > { %v2560_v30 = vpop.f32.mrb[15].mxu0 }
 0x6b7   : > { %v1571_v32 = vpop.f32.mrb[16].mxu0 }
 0x6b8   : > { %1800 = vrot.lane.b32.xlu0 %v1571_v32, %s2784_s19  ;;  %v2571_v33 = vpop.f32.mrb[17].mxu0  ;;  %s3368_s19 = sld [smem:[#allocation24_spill]] (!%p2451_p8) }
 0x6b9   : > { %v1574_v34 = vpop.f32.mrb[18].mxu0  ;;  %v2442_v33 = vld [vmem:[%s939_s7] ss:$0 sm:$0xff] }
 0x6ba   : > { %v2572_v36 = vpop.f32.mrb[19].mxu0 }
 0x6bf   : > { %v1682_v37 = vpop.f32.mrb[20].mxu0 }
 0x6c0   : > { %1804 = vrot.lane.b32.xlu1 %v1682_v37, %s2785_s6  ;;  %v2583_v38 = vpop.f32.mrb[21].mxu0 }
 0x6c1   : > { %v1685_v39 = vpop.f32.mrb[22].mxu0 }
 0x6c2   : > { %v2584_v40 = vpop.f32.mrb[23].mxu0 }
 0x6eb   : > { %v1793_v42 = vpop.f32.mrb[24].mxu0 }
 0x6ec   : > { %1808 = vrot.lane.b32.xlu0 %v1793_v42, %s2786_s14  ;;  %v2595_v43 = vpop.f32.mrb[25].mxu0 }
 0x6ed   : > { %v1796_v44 = vpop.f32.mrb[26].mxu0 }
 0x6ee   : > { %v2596_v45 = vpop.f32.mrb[27].mxu0 }
 0x72a   : > { %v1801_v46 = vpop.permute.xlu0 %1800 }
 0x72b   : > { %v1811_v48 = vsel %vm1356_vm3, %v1457_v26, %v1801_v46 }
 0x732   : > { %v1805_v47 = vpop.permute.xlu1 %1804 }
 0x733   : > { %v1813_v49 = vsel %vm1812_vm6, %v1811_v48, %v1805_v47 }
 0x75e   : > { %v1809_v50 = vpop.permute.xlu0 %1808 }
 0x75f   : > { %v1815_v51 = vsel %vm1814_vm7, %v1813_v49, %v1809_v50 }
 0x760   : > { %v1816_v52 = vpack.c.bf16 %v1815_v51, %v1815_v51  ;;  %v2452_v51 = vld [vmem:[%s3368_s19] ss:$0 sm:$0xff] (!%p2451_p8) }
 0x762   : > { %2602 = vmatmul.mubr.msk.bf16.vlgmr.msra.gmra.mrb[16].mxu1 %vm1127_vm1, %v1816_v52 }
 0x763   : > { %2629 = vmatprep.mubr.msk.bf16.mxu1 %vm2780_vm2, %v2779_v35  ;;  %2614 = vmatpush3.bf16.msra.mxu1 %v2707_v3 }
 0x764   : > { %2615 = vmatprep.subr.bf16.mxu1 %v2779_v35 }
 0x767   : > { %2616 = vmatpush3.bf16.msra.mxu1 %v2708_v4 }
 0x768   : > { %2617 = vmatprep.subr.bf16.mxu1 %v2779_v35 }
 0x76b   : > { %2618 = vmatpush3.bf16.msra.mxu1 %v2709_v5 }
 0x76c   : > { %2619 = vmatprep.subr.bf16.mxu1 %v2779_v35 }
 0x76f   : > { %2620 = vmatpush3.bf16.msra.mxu1 %v2710_v17 }
 0x770   : > { %2621 = vmatprep.subr.bf16.mxu1 %v2779_v35 }
 0x773   : > { %2622 = vmatpush3.bf16.msra.mxu1 %v2711_v8 }
 0x774   : > { %2623 = vmatprep.subr.bf16.mxu1 %v2779_v35 }
 0x777   : > { %2624 = vmatpush3.bf16.msra.mxu1 %v2712_v18 }
 0x778   : > { %2625 = vmatprep.subr.bf16.mxu1 %v2779_v35 }
 0x77b   : > { %2626 = vmatpush3.bf16.msra.mxu1 %v2713_v19 }
 0x77c   : > { %2627 = vmatprep.subr.bf16.mxu1 %v2779_v35 }
 0x77f   : > { %2628 = vmatpush3.bf16.msra.mxu1 %v2714_v20 }
 0x835   : > { %v1877_v54 = vpop.f32.mrb[16].mxu1 }
 0x836   : > { %v1878_v55 = vadd.f32 %v2432_v53, %v1877_v54  ;;  %v2603_v56 = vpop.f32.mrb[17].mxu1  ;;  %v2453_v53 = vld [vmem:[%s3369_s25] ss:$0 sm:$0xff] (!%p2451_p8) }
 0x837   : > { %v1880_v57 = vpop.f32.mrb[18].mxu1 }
 0x838   : > { %v3211_v58 = vadd.f32 %v1878_v55, %v3072_v27  ;;  %v2604_v59 = vpop.f32.mrb[19].mxu1  ;;  %v2706_v27 = vld [vmem:[%s2999_s4 + $0x8] sm:$0xff]  }
 0x839   : > { %2608 = vmatpush3.bf16.msra.mxu0 %v2706_v27 }
 0x83a   : > { %v1886_v60 = vsel %vm1127_vm1, %v3211_v58, 0.0 }
 0x83b   : > { %1887 = vadd.xlane.f32.xlu1 %v1886_v60 }
 0x8c8   : > { %v1888_v61 = vpop.xlane.xlu1 %1887 }
 0x8c9   : > { %v1889_v62 = vmul.f32 0.03125, %v1888_v61 }
 0x8cb   : > { %v1890_v63 = vsub.f32 %v3211_v58, %v1889_v62 }
 0x8cd   : > { %v1891_v0 = vmul.f32 %v1890_v63, %v1890_v63 }
 0x8cf   : > { %v1892_v1 = vsel %vm1127_vm1, %v1891_v0, 0.0 }
 0x8d0   : > { %1893 = vadd.xlane.f32.xlu0 %v1892_v1 }
 0x95d   : > { %v1894_v6 = vpop.xlane.xlu0 %1893 }
 0x95e   : > { %v1895_v7 = vmul.f32 0.03125, %v1894_v6 }
 0x960   : > { %v1896_v9 = vadd.f32 1e-06, %v1895_v7 }
 0x962   : > { %2733 = vrsqrt.f32 %v1896_v9 }
 0x96c   : > { %v2734_v10 = vpop.eup %2733 }
 0x96d   : > { %v1898_v12 = vmul.f32 %v2734_v10, %v1890_v63 }
 0x96f   : > { %v1905_v14 = vmul.f32 %v2436_v11, %v1898_v12 }
 0x971   : > { %v1912_v15 = vadd.f32 %v2437_v13, %v1905_v14 }
 0x973   : > { %v1913_v16 = vpack.c.bf16 %v1912_v15, %v1912_v15 }
 0x975   : > { %2610 = vmatmul.mubr.msk.bf16.vlgmr.msra.gmra.mrb[28].mxu0 %vm1127_vm1, %v1913_v16 }
 0xa48   : > { %v1974_v22 = vpop.f32.mrb[28].mxu0 }
 0xa49   : > { %v1975_v23 = vadd.f32 %v2438_v21, %v1974_v22  ;;  %v2611_v24 = vpop.f32.mrb[29].mxu0 }
 0xa4a   : > { %v1977_v25 = vpop.f32.mrb[30].mxu0 }
 0xa4b   : > { %v1981_v26 = vmul.f32 0.70710677, %v1975_v23  ;;  %v2612_v28 = vpop.f32.mrb[31].mxu0  ;;  %v1980_v30 = vmul.f32 0.5, %v1975_v23 }
 0xa4d   : > { %2735 = verf.f32 %v1981_v26 }
 0xa57   : > { %v2736_v29 = vpop.eup %2735 }
 0xa58   : > { %v1983_v31 = vadd.f32 1.0, %v2736_v29 }
 0xa5a   : > { %v1984_v32 = vmul.f32 %v1983_v31, %v1980_v30 }
 0xa5c   : > { %v1985_v35 = vpack.c.bf16 %v1984_v32, %v1984_v32 }
 0xa5e   : > { %2630 = vmatmul.mubr.bf16.vlgmr.msra.gmra.mrb[20].mxu1 %v1985_v35 }
 0xb30   : > { %2102 = sbr.rel (%p2451_p8) target bundleno = 3185 (0xc71), region = 112 }
 0xb31   : > { %v2091_v34 = vpop.f32.mrb[20].mxu1 }
 0xb32   : > { %v2092_v36 = vadd.f32 %v2442_v33, %v2091_v34  ;;  %v2631_v37 = vpop.f32.mrb[21].mxu1 }
 0xb33   : > { %v2094_v38 = vpop.f32.mrb[22].mxu1 }
 0xb34   : > { %v2097_v39 = vadd.f32 %v2092_v36, %v3211_v58  ;;  %v2632_v40 = vpop.f32.mrb[23].mxu1 }
 0xb36   : > { %2098 = vst.msk [vmem:[#allocation2] sm:$0xff] %vm1127_vm1, %v2097_v39  ;;  %v2105_v41 = vsel (!%p2451_p8), %vm1127_vm1, %v2097_v39, 0.0 }
 0xb37   : > { %2106 = vadd.xlane.f32.xlu0 %v2105_v41 }
 0xbc4   : > { %v2107_v42 = vpop.xlane.xlu0 %2106 }
 0xbc5   : > { %v2108_v43 = vmul.f32 0.03125, %v2107_v42 }
 0xbc7   : > { %v2109_v44 = vsub.f32 %v2097_v39, %v2108_v43 }
 0xbc9   : > { %v2110_v45 = vmul.f32 %v2109_v44, %v2109_v44 }
 0xbcb   : > { %v2111_v46 = vsel %vm1127_vm1, %v2110_v45, 0.0 }
 0xbcc   : > { %2112 = vadd.xlane.f32.xlu0 %v2111_v46 }
 0xc59   : > { %v2113_v47 = vpop.xlane.xlu0 %2112 }
 0xc5a   : > { %v2114_v48 = vmul.f32 0.03125, %v2113_v47 }
 0xc5c   : > { %v2115_v49 = vadd.f32 1e-06, %v2114_v48 }
 0xc5e   : > { %2737 = vrsqrt.f32 %v2115_v49 }
 0xc68   : > { %v2738_v50 = vpop.eup %2737 }
 0xc69   : > { %v2117_v52 = vmul.f32 %v2738_v50, %v2109_v44 }
 0xc6b   : > { %v2124_v54 = vmul.f32 %v2452_v51, %v2117_v52 }
 0xc6d   : > { %v2131_v55 = vadd.f32 %v2453_v53, %v2124_v54 }
 0xc6f   : > { %v2132_v56 = vsel %vm1127_vm1, %v2131_v55, 0.0 }
 0xc70   : > { %2133 = vst [vmem:[%s3018_s5] sm:$0xff] %v2132_v56 }
 0xc71 PF: > { %s3370_s2 = sld [smem:[#allocation6_spill]]  ;;  %s3372_s25 = sld [smem:[#allocation5_spill]] }
 0xc72   : > { %s3373_s26 = sld [smem:[#allocation7_spill]]  ;;  %s3374_s27 = sld [smem:[#allocation8_spill]] }
 0xc77   : > { %s31_s3 = sadd.s32 1, %s3370_s2   ;;  %s3371_s2 = sld [smem:[#allocation4_spill]] }
 0xc78   : > { %p28_p9 = scmp.ge.s32.totalorder %s31_s3, 6  }
 0xc7a   :  { %30 = sbr.rel (!%p28_p9) target bundleno = 17 (0x11), region = 193 }

</bundles_post_ra>
